<compile_context>
chip_gen: v5e
topology: v5e:2x2
jax: 0.10.0
libtpu: 0.0.40
codegen_flags: <defaults>
</compile_context>

<pallas_src>
import functools

import jax
import jax.numpy as jnp
from jax.experimental import pallas as pl
from jax.experimental.pallas import tpu as pltpu


# Lane-aligned zero guard band on each side of the flattened H*W axis.  It
# absorbs every out-of-image tap ROW (kh = 0/2 at the first/last image row);
# out-of-image tap COLUMNS are killed by the precomputed 0/1 masks instead.
_G = 128


# ----------------------------- helpers --------------------------------------


def _derive_vmem_limit():
    try:
        info = pltpu.get_tpu_info()
        phys = int(getattr(info, "vmem_capacity_bytes", 64 * 1024 * 1024))
    except Exception:
        phys = 64 * 1024 * 1024  # conservative (v7x-sized) fallback
    # ~75% of physical, capped: 96 MiB on 128 MiB parts (v5e/v6e), 48 MiB on v7x.
    return min(96 * 1024 * 1024, (phys * 3) // 4)


def _padded_bytes(shape, itemsize=4):
    """VMEM footprint of an f32 block including (8, 128) tile padding."""
    shape = tuple(int(d) for d in shape)
    if not shape:
        return itemsize
    if len(shape) == 1:
        return max(shape[0] * itemsize, 8 * 128 * itemsize)
    lead = 1
    for d in shape[:-2]:
        lead *= d
    sub = -(-shape[-2] // 8) * 8
    lane = -(-shape[-1] // 128) * 128
    return lead * sub * lane * itemsize


def _row_chunks(H, W, cout):
    """Row-chunk the conv: >=~256 output lanes per pass but a bounded
    (cout, rt*W) f32 accumulator (vreg-pressure review item)."""
    lane_target = 256
    acc_budget = 32 * 1024  # bytes of f32 accumulator per chunk
    rt = min(H,
             max(1, lane_target // max(W, 1)),
             max(1, acc_budget // (4 * max(cout, 1) * max(W, 1))))
    return tuple((h0, min(rt, H - h0)) for h0 in range(0, H, rt))


# ----------------------------- kernel ----------------------------------------


def _make_resblock_kernel(H, W, chunks, has_proj):
    HW = H * W

    def conv3x3_chunk(src_ref, w_ref, m0, m2, h0, rt):
        """One row-chunk of a 3x3 'same' conv in flat (C, H*W) layout.

        For output flat position p = i*W + j, tap (kh, kw) reads input flat
        position p + (kh-1)*W + (kw-1).  The guard bands absorb out-of-image
        rows; m0/m2 zero the columns where kw=0/2 would wrap into the adjacent
        row.  src_ref: (C_in, _G + H*W + _G); w_ref: (9, C_out, C_in) with the
        BN scale folded into the C_out rows.  Returns (C_out, rt*W) f32.
        """
        L = rt * W
        cout = w_ref.shape[1]
        acc = jnp.zeros((cout, L), jnp.float32)
        for kh in range(3):
            base = _G + (h0 + kh - 1) * W
            for kw in range(3):
                patch = src_ref[:, base + (kw - 1):base + (kw - 1) + L]
                if kw == 0:        # left tap: column 0 would read the previous row
                    patch = patch * m0
                elif kw == 2:      # right tap: column W-1 would read the next row
                    patch = patch * m2
                acc = acc + jnp.dot(w_ref[3 * kh + kw], patch,
                                    preferred_element_type=jnp.float32)
        return acc

    def kernel(x_ref, w1_ref, b1_ref, w2_ref, b2_ref, masks_ref, *rest):
        if has_proj:
            wd_ref, o_ref, xs_ref, ys_ref = rest
        else:
            o_ref, xs_ref, ys_ref = rest
        cin = x_ref.shape[1]
        cout = o_ref.shape[1]

        # Zero ONLY the guard bands (not the whole scratch) every step; the
        # interiors are fully overwritten below.  Re-zeroing tiny bands per step
        # (instead of a program_id==0 one-shot) keeps the kernel state-free
        # across grid steps, so the batch axis can be megacore-parallel.
        xs_ref[:, 0:_G] = jnp.zeros((cin, _G), jnp.float32)
        xs_ref[:, _G + HW:_G + HW + _G] = jnp.zeros((cin, _G), jnp.float32)
        ys_ref[:, 0:_G] = jnp.zeros((cout, _G), jnp.float32)
        ys_ref[:, _G + HW:_G + HW + _G] = jnp.zeros((cout, _G), jnp.float32)
        # Lane-dense, aligned interior copy of this image (no layout change).
        xs_ref[:, _G:_G + HW] = x_ref[0]

        # Stage 1: conv1 -> bn1 -> relu.  The activation never leaves VMEM.
        for h0, rt in chunks:
            L = rt * W
            m0 = masks_ref[0:1, h0 * W:h0 * W + L]
            m2 = masks_ref[1:2, h0 * W:h0 * W + L]
            acc = conv3x3_chunk(xs_ref, w1_ref, m0, m2, h0, rt)
            ys_ref[:, _G + h0 * W:_G + h0 * W + L] = (
                jnp.maximum(acc + b1_ref[...], 0.0))

        # Stage 2: conv2 -> bn2, fused shortcut add and final relu.
        for h0, rt in chunks:
            L = rt * W
            m0 = masks_ref[0:1, h0 * W:h0 * W + L]
            m2 = masks_ref[1:2, h0 * W:h0 * W + L]
            acc = conv3x3_chunk(ys_ref, w2_ref, m0, m2, h0, rt)
            x_sl = xs_ref[:, _G + h0 * W:_G + h0 * W + L]
            if has_proj:
                # 1x1-conv projection; bnd scale folded into wd, bnd bias merged
                # into b2 (valid because the add precedes the final ReLU).
                sc = jnp.dot(wd_ref[...], x_sl,
                             preferred_element_type=jnp.float32)
            else:
                sc = x_sl
            # Lane-dense (>=128 lanes), aligned output store.
            o_ref[0, :, h0 * W:h0 * W + L] = (
                jnp.maximum(acc + b2_ref[...] + sc, 0.0))

    return kernel


# ----------------------------- pallas_call wrapper ---------------------------


def _fused_resblock(x_flat, w1, b1, w2, b2, masks, H, W, wd=None):
    N, Cin, HW = x_flat.shape
    Cout = w1.shape[1]
    chunks = _row_chunks(H, W, Cout)
    has_proj = wd is not None

    in_arrays = [x_flat, w1, b1, w2, b2, masks]
    in_specs = [
        pl.BlockSpec((1, Cin, HW), lambda n: (n, 0, 0)),
        pl.BlockSpec((9, Cout, Cin), lambda n: (0, 0, 0)),
        pl.BlockSpec((Cout, 1), lambda n: (0, 0)),
        pl.BlockSpec((9, Cout, Cout), lambda n: (0, 0, 0)),
        pl.BlockSpec((Cout, 1), lambda n: (0, 0)),
        pl.BlockSpec((2, HW), lambda n: (0, 0)),
    ]
    block_shapes = [(1, Cin, HW), (9, Cout, Cin), (Cout, 1), (9, Cout, Cout),
                    (Cout, 1), (2, HW)]
    if has_proj:
        in_arrays.append(wd)
        in_specs.append(pl.BlockSpec((Cout, Cin), lambda n: (0, 0)))
        block_shapes.append((Cout, Cin))
        extra_flops = 2 * N * HW * Cin * Cout
    else:
        extra_flops = N * HW * Cout
    block_shapes.append((1, Cout, HW))  # output block

    flops = 2 * N * HW * Cout * 9 * (Cin + Cout) + extra_flops
    bytes_accessed = 4 * (sum(int(a.size) for a in in_arrays) + N * HW * Cout)

    scratch_shapes = [
        pltpu.VMEM((Cin, HW + 2 * _G), jnp.float32),
        pltpu.VMEM((Cout, HW + 2 * _G), jnp.float32),
    ]

    # VMEM budget including (8, 128) tile padding (review: the raw-byte estimate
    # under-counted by up to ~40x at small channel counts).
    block_bytes = sum(_padded_bytes(s) for s in block_shapes)
    scratch_bytes = (_padded_bytes((Cin, HW + 2 * _G))
                     + _padded_bytes((Cout, HW + 2 * _G)))
    vmem_needed = 2 * block_bytes + scratch_bytes  # x2: double-buffered I/O
    vmem_limit = _derive_vmem_limit()
    assert vmem_needed <= vmem_limit, (
        "TODO(synk): add a row-tiled (halo) grid axis for feature maps too "
        f"large for VMEM ({vmem_needed} > {vmem_limit} bytes)")

    kernel = _make_resblock_kernel(H, W, chunks, has_proj)
    return pl.pallas_call(
        kernel,
        out_shape=jax.ShapeDtypeStruct((N, Cout, HW), jnp.float32),
        grid_spec=pltpu.PrefetchScalarGridSpec(
            num_scalar_prefetch=0,
            grid=(N,),
            in_specs=in_specs,
            out_specs=pl.BlockSpec((1, Cout, HW), lambda n: (n, 0, 0)),
            scratch_shapes=scratch_shapes,
        ),
        compiler_params=pltpu.CompilerParams(
            # Batch elements are independent -> shard across the 2 TCs on v7x.
            dimension_semantics=("parallel",),
            vmem_limit_bytes=vmem_limit,
        ),
        cost_estimate=pl.CostEstimate(
            flops=flops, transcendentals=0, bytes_accessed=bytes_accessed),
    )(*in_arrays)


# ----------------------------- glue / parameter prep -------------------------


def _fold_bn(gamma, beta, mean, var, eps=1e-5):
    scale = (gamma / jnp.sqrt(var + eps)).astype(jnp.float32)
    bias = (beta - mean * scale).astype(jnp.float32)
    return scale, bias


def _conv_w_to_taps(w, scale):
    # (Cout, Cin, 3, 3) -> (9, Cout, Cin); BN scale folded into the Cout rows.
    cout, cin = w.shape[0], w.shape[1]
    taps = jnp.transpose(w, (2, 3, 0, 1)).reshape(9, cout, cin)
    return (taps * scale[None, :, None]).astype(jnp.float32)


@functools.partial(jax.jit, static_argnames=("stride",))
def res_block_forward(x_nchw, params, stride=1):
    """Pallas ResBlock forward.  Input/output are NCHW (PyTorch convention).

    The kernel natively consumes/produces the flattened NCHW layout
    (N, C, H*W), so there are no HBM layout transposes here -- only free
    reshapes (review item: avoid wrapper-side NCHW<->NHWC round trips).
    """
    assert stride == 1, "TODO(synk): stride != 1 not implemented"
    N, Cin, H, W = x_nchw.shape
    cout = params["w1"].shape[0]
    x_flat = x_nchw.reshape(N, Cin, H * W).astype(jnp.float32)

    # 0/1 masks killing the left/right conv taps in the first/last image column
    # (the flattened layout would otherwise wrap into the adjacent row).
    col = jnp.arange(H * W, dtype=jnp.int32) % W
    masks = jnp.stack([(col != 0), (col != W - 1)]).astype(jnp.float32)

    s1, b1 = _fold_bn(params["bn1_gamma"], params["bn1_beta"],
                      params["bn1_mean"], params["bn1_var"])
    s2, b2 = _fold_bn(params["bn2_gamma"], params["bn2_beta"],
                      params["bn2_mean"], params["bn2_var"])
    w1 = _conv_w_to_taps(params["w1"], s1)
    w2 = _conv_w_to_taps(params["w2"], s2)

    if "wd" in params:
        sd, bd = _fold_bn(params["bnd_gamma"], params["bnd_beta"],
                          params["bnd_mean"], params["bnd_var"])
        wd = (params["wd"][:, :, 0, 0] * sd[:, None]).astype(jnp.float32)
        out = _fused_resblock(x_flat, w1, b1.reshape(cout, 1), w2,
                              (b2 + bd).reshape(cout, 1), masks, H, W, wd)
    else:
        out = _fused_resblock(x_flat, w1, b1.reshape(cout, 1), w2,
                              b2.reshape(cout, 1), masks, H, W)

    return out.reshape(N, cout, H, W)


# ----------------------------- reference & init ------------------------------


def res_block_ref(x_nchw, params):
    x = jnp.transpose(x_nchw, (0, 2, 3, 1)).astype(jnp.float32)

    def conv(inp, w):
        pad = (w.shape[2] - 1) // 2
        return jax.lax.conv_general_dilated(
            inp, jnp.transpose(w, (2, 3, 1, 0)),
            window_strides=(1, 1), padding=[(pad, pad), (pad, pad)],
            dimension_numbers=("NHWC", "HWIO", "NHWC"))

    def bn(y, pfx):
        g, b = params[pfx + "_gamma"], params[pfx + "_beta"]
        m, v = params[pfx + "_mean"], params[pfx + "_var"]
        return (y - m) / jnp.sqrt(v + 1e-5) * g + b

    out = jnp.maximum(bn(conv(x, params["w1"]), "bn1"), 0.0)
    out = bn(conv(out, params["w2"]), "bn2")
    if "wd" in params:
        shortcut = bn(conv(x, params["wd"]), "bnd")
    else:
        shortcut = x
    out = jnp.maximum(out + shortcut, 0.0)
    return jnp.transpose(out, (0, 3, 1, 2))


def init_params(key, cin, cout):
    ks = jax.random.split(key, 15)

    def bn_params(k0, k1, k2, k3, c):
        return (1.0 + 0.1 * jax.random.normal(k0, (c,), jnp.float32),
                0.1 * jax.random.normal(k1, (c,), jnp.float32),
                0.1 * jax.random.normal(k2, (c,), jnp.float32),
                0.5 + 0.5 * jnp.abs(jax.random.normal(k3, (c,), jnp.float32)))

    p = {
        "w1": 0.2 * jax.random.normal(ks[0], (cout, cin, 3, 3), jnp.float32),
        "w2": 0.2 * jax.random.normal(ks[1], (cout, cout, 3, 3), jnp.float32),
    }
    (p["bn1_gamma"], p["bn1_beta"],
     p["bn1_mean"], p["bn1_var"]) = bn_params(ks[2], ks[3], ks[4], ks[5], cout)
    (p["bn2_gamma"], p["bn2_beta"],
     p["bn2_mean"], p["bn2_var"]) = bn_params(ks[6], ks[7], ks[8], ks[9], cout)
    if cin != cout:
        p["wd"] = 0.2 * jax.random.normal(ks[10], (cout, cin, 1, 1),
                                          jnp.float32)
        (p["bnd_gamma"], p["bnd_beta"],
         p["bnd_mean"], p["bnd_var"]) = bn_params(ks[11], ks[12], ks[13],
                                                  ks[14], cout)
    return p


if __name__ == "__main__":
    key = jax.random.PRNGKey(0)
    kx, kp, kx2, kp2 = jax.random.split(key, 4)

    N, Cin, H, W = 2, 4, 16, 16
    Cout = 8

    # Projection-shortcut variant (inchannel != outchannel, stride=1).
    x = jax.random.normal(kx, (N, Cin, H, W), jnp.float32)
    params = init_params(kp, Cin, Cout)
    out = jax.block_until_ready(res_block_forward(x, params))
    ref = res_block_ref(x, params)
    assert out.shape == (N, Cout, H, W), out.shape
    assert jnp.allclose(out, ref, atol=1e-4, rtol=1e-4), \
        float(jnp.max(jnp.abs(out - ref)))

    # Identity-shortcut variant (inchannel == outchannel, stride=1).
    x2 = jax.random.normal(kx2, (N, Cout, H, W), jnp.float32)
    params_id = init_params(kp2, Cout, Cout)
    out2 = jax.block_until_ready(res_block_forward(x2, params_id))
    ref2 = res_block_ref(x2, params_id)
    assert out2.shape == (N, Cout, H, W), out2.shape
    assert jnp.allclose(out2, ref2, atol=1e-4, rtol=1e-4), \
        float(jnp.max(jnp.abs(out2 - ref2)))

    print("KERNEL_OK")
</pallas_src>

<mosaic_0001>
module attributes {stable_mosaic.version = 11 : i64} {
  func.func @kernel(%arg0: i32, %arg1: memref<1x4x256xf32, #tpu.memory_space<vmem>>, %arg2: memref<9x8x4xf32, #tpu.memory_space<vmem>>, %arg3: memref<8x1xf32, #tpu.memory_space<vmem>>, %arg4: memref<9x8x8xf32, #tpu.memory_space<vmem>>, %arg5: memref<8x1xf32, #tpu.memory_space<vmem>>, %arg6: memref<2x256xf32, #tpu.memory_space<vmem>>, %arg7: memref<8x4xf32, #tpu.memory_space<vmem>>, %arg8: memref<1x8x256xf32, #tpu.memory_space<vmem>>, %arg9: memref<4x512xf32, #tpu.memory_space<vmem>>, %arg10: memref<8x512xf32, #tpu.memory_space<vmem>>) attributes {dimension_semantics = [#tpu.dimension_semantics<parallel>], iteration_bounds = array<i64: 2>, scalar_prefetch = 0 : i64, scratch_operands = 2 : i64, tpu.core_type = #tpu.core_type<tc>, window_params = [{transform_indices = @transform_0, window_bounds = array<i64: 1, 4, 256>}, {pipeline_mode = #tpu.pipeline_mode<synchronous>, transform_indices = @transform_1, window_bounds = array<i64: 9, 8, 4>}, {pipeline_mode = #tpu.pipeline_mode<synchronous>, transform_indices = @transform_2, window_bounds = array<i64: 8, 1>}, {pipeline_mode = #tpu.pipeline_mode<synchronous>, transform_indices = @transform_3, window_bounds = array<i64: 9, 8, 8>}, {pipeline_mode = #tpu.pipeline_mode<synchronous>, transform_indices = @transform_4, window_bounds = array<i64: 8, 1>}, {pipeline_mode = #tpu.pipeline_mode<synchronous>, transform_indices = @transform_5, window_bounds = array<i64: 2, 256>}, {pipeline_mode = #tpu.pipeline_mode<synchronous>, transform_indices = @transform_6, window_bounds = array<i64: 8, 4>}, {transform_indices = @transform_7, window_bounds = array<i64: 1, 8, 256>}]} {
    %cst = arith.constant 0.000000e+00 : f32
    %0 = vector.broadcast %cst : f32 to vector<4x128xf32>
    %c0 = arith.constant 0 : index
    %c0_0 = arith.constant 0 : index
    %1 = vector.load %arg9[%c0, %c0_0] : memref<4x512xf32, #tpu.memory_space<vmem>>, vector<4x128xf32>
    tpu.vector_store %arg9[%c0, %c0_0], %0 {strides = array<i32>} : memref<4x512xf32, #tpu.memory_space<vmem>>, vector<4x128xf32>,
    %cst_1 = arith.constant 0.000000e+00 : f32
    %2 = vector.broadcast %cst_1 : f32 to vector<4x128xf32>
    %c0_2 = arith.constant 0 : index
    %c384 = arith.constant 384 : index
    %3 = vector.load %arg9[%c0_2, %c384] : memref<4x512xf32, #tpu.memory_space<vmem>>, vector<4x128xf32>
    tpu.vector_store %arg9[%c0_2, %c384], %2 {strides = array<i32>} : memref<4x512xf32, #tpu.memory_space<vmem>>, vector<4x128xf32>,
    %cst_3 = arith.constant 0.000000e+00 : f32
    %4 = vector.broadcast %cst_3 : f32 to vector<8x128xf32>
    %c0_4 = arith.constant 0 : index
    %c0_5 = arith.constant 0 : index
    %5 = vector.load %arg10[%c0_4, %c0_5] : memref<8x512xf32, #tpu.memory_space<vmem>>, vector<8x128xf32>
    tpu.vector_store %arg10[%c0_4, %c0_5], %4 {strides = array<i32>} : memref<8x512xf32, #tpu.memory_space<vmem>>, vector<8x128xf32>,
    %cst_6 = arith.constant 0.000000e+00 : f32
    %6 = vector.broadcast %cst_6 : f32 to vector<8x128xf32>
    %c0_7 = arith.constant 0 : index
    %c384_8 = arith.constant 384 : index
    %7 = vector.load %arg10[%c0_7, %c384_8] : memref<8x512xf32, #tpu.memory_space<vmem>>, vector<8x128xf32>
    tpu.vector_store %arg10[%c0_7, %c384_8], %6 {strides = array<i32>} : memref<8x512xf32, #tpu.memory_space<vmem>>, vector<8x128xf32>,
    %c0_9 = arith.constant 0 : index
    %c0_10 = arith.constant 0 : index
    %c0_11 = arith.constant 0 : index
    %8 = vector.load %arg1[%c0_9, %c0_10, %c0_11] : memref<1x4x256xf32, #tpu.memory_space<vmem>>, vector<1x4x256xf32>
    %9 = vector.shape_cast %8 : vector<1x4x256xf32> to vector<4x256xf32>
    %c0_12 = arith.constant 0 : index
    %c128 = arith.constant 128 : index
    %10 = vector.load %arg9[%c0_12, %c128] : memref<4x512xf32, #tpu.memory_space<vmem>>, vector<4x256xf32>
    tpu.vector_store %arg9[%c0_12, %c128], %9 {strides = array<i32>} : memref<4x512xf32, #tpu.memory_space<vmem>>, vector<4x256xf32>,
    %c0_13 = arith.constant 0 : index
    %c0_14 = arith.constant 0 : index
    %11 = vector.load %arg6[%c0_13, %c0_14] : memref<2x256xf32, #tpu.memory_space<vmem>>, vector<1x256xf32>
    %c1 = arith.constant 1 : index
    %c0_15 = arith.constant 0 : index
    %12 = vector.load %arg6[%c1, %c0_15] : memref<2x256xf32, #tpu.memory_space<vmem>>, vector<1x256xf32>
    %cst_16 = arith.constant 0.000000e+00 : f32
    %13 = vector.broadcast %cst_16 : f32 to vector<8x256xf32>
    %c0_17 = arith.constant 0 : index
    %c111 = arith.constant 111 : index
    %14 = vector.load %arg9[%c0_17, %c111] : memref<4x512xf32, #tpu.memory_space<vmem>>, vector<4x256xf32>
    %15 = vector.broadcast %11 : vector<1x256xf32> to vector<4x256xf32>
    %16 = arith.mulf %14, %15 : vector<4x256xf32>
    %c0_18 = arith.constant 0 : index
    %c0_19 = arith.constant 0 : index
    %c0_20 = arith.constant 0 : index
    %17 = vector.load %arg2[%c0_18, %c0_19, %c0_20] : memref<9x8x4xf32, #tpu.memory_space<vmem>>, vector<1x8x4xf32>
    %18 = vector.shape_cast %17 : vector<1x8x4xf32> to vector<8x4xf32>
    %cst_21 = arith.constant dense<0.000000e+00> : vector<8x256xf32>
    %19 = tpu.matmul %18, %16, %cst_21 {dimension_numbers = #tpu.dot_dimension_numbers<[1], [0], [0], [1], [0, 0, 1, 1], [], []>} : vector<8x4xf32>, vector<4x256xf32>, vector<8x256xf32> -> vector<8x256xf32>
    %20 = arith.addf %13, %19 : vector<8x256xf32>
    %c0_22 = arith.constant 0 : index
    %c112 = arith.constant 112 : index
    %21 = vector.load %arg9[%c0_22, %c112] : memref<4x512xf32, #tpu.memory_space<vmem>>, vector<4x256xf32>
    %c1_23 = arith.constant 1 : index
    %c0_24 = arith.constant 0 : index
    %c0_25 = arith.constant 0 : index
    %22 = vector.load %arg2[%c1_23, %c0_24, %c0_25] : memref<9x8x4xf32, #tpu.memory_space<vmem>>, vector<1x8x4xf32>
    %23 = vector.shape_cast %22 : vector<1x8x4xf32> to vector<8x4xf32>
    %cst_26 = arith.constant dense<0.000000e+00> : vector<8x256xf32>
    %24 = tpu.matmul %23, %21, %cst_26 {dimension_numbers = #tpu.dot_dimension_numbers<[1], [0], [0], [1], [0, 0, 1, 1], [], []>} : vector<8x4xf32>, vector<4x256xf32>, vector<8x256xf32> -> vector<8x256xf32>
    %25 = arith.addf %20, %24 : vector<8x256xf32>
    %c0_27 = arith.constant 0 : index
    %c113 = arith.constant 113 : index
    %26 = vector.load %arg9[%c0_27, %c113] : memref<4x512xf32, #tpu.memory_space<vmem>>, vector<4x256xf32>
    %27 = vector.broadcast %12 : vector<1x256xf32> to vector<4x256xf32>
    %28 = arith.mulf %26, %27 : vector<4x256xf32>
    %c2 = arith.constant 2 : index
    %c0_28 = arith.constant 0 : index
    %c0_29 = arith.constant 0 : index
    %29 = vector.load %arg2[%c2, %c0_28, %c0_29] : memref<9x8x4xf32, #tpu.memory_space<vmem>>, vector<1x8x4xf32>
    %30 = vector.shape_cast %29 : vector<1x8x4xf32> to vector<8x4xf32>
    %cst_30 = arith.constant dense<0.000000e+00> : vector<8x256xf32>
    %31 = tpu.matmul %30, %28, %cst_30 {dimension_numbers = #tpu.dot_dimension_numbers<[1], [0], [0], [1], [0, 0, 1, 1], [], []>} : vector<8x4xf32>, vector<4x256xf32>, vector<8x256xf32> -> vector<8x256xf32>
    %32 = arith.addf %25, %31 : vector<8x256xf32>
    %c0_31 = arith.constant 0 : index
    %c127 = arith.constant 127 : index
    %33 = vector.load %arg9[%c0_31, %c127] : memref<4x512xf32, #tpu.memory_space<vmem>>, vector<4x256xf32>
    %34 = vector.broadcast %11 : vector<1x256xf32> to vector<4x256xf32>
    %35 = arith.mulf %33, %34 : vector<4x256xf32>
    %c3 = arith.constant 3 : index
    %c0_32 = arith.constant 0 : index
    %c0_33 = arith.constant 0 : index
    %36 = vector.load %arg2[%c3, %c0_32, %c0_33] : memref<9x8x4xf32, #tpu.memory_space<vmem>>, vector<1x8x4xf32>
    %37 = vector.shape_cast %36 : vector<1x8x4xf32> to vector<8x4xf32>
    %cst_34 = arith.constant dense<0.000000e+00> : vector<8x256xf32>
    %38 = tpu.matmul %37, %35, %cst_34 {dimension_numbers = #tpu.dot_dimension_numbers<[1], [0], [0], [1], [0, 0, 1, 1], [], []>} : vector<8x4xf32>, vector<4x256xf32>, vector<8x256xf32> -> vector<8x256xf32>
    %39 = arith.addf %32, %38 : vector<8x256xf32>
    %c0_35 = arith.constant 0 : index
    %c128_36 = arith.constant 128 : index
    %40 = vector.load %arg9[%c0_35, %c128_36] : memref<4x512xf32, #tpu.memory_space<vmem>>, vector<4x256xf32>
    %c4 = arith.constant 4 : index
    %c0_37 = arith.constant 0 : index
    %c0_38 = arith.constant 0 : index
    %41 = vector.load %arg2[%c4, %c0_37, %c0_38] : memref<9x8x4xf32, #tpu.memory_space<vmem>>, vector<1x8x4xf32>
    %42 = vector.shape_cast %41 : vector<1x8x4xf32> to vector<8x4xf32>
    %cst_39 = arith.constant dense<0.000000e+00> : vector<8x256xf32>
    %43 = tpu.matmul %42, %40, %cst_39 {dimension_numbers = #tpu.dot_dimension_numbers<[1], [0], [0], [1], [0, 0, 1, 1], [], []>} : vector<8x4xf32>, vector<4x256xf32>, vector<8x256xf32> -> vector<8x256xf32>
    %44 = arith.addf %39, %43 : vector<8x256xf32>
    %c0_40 = arith.constant 0 : index
    %c129 = arith.constant 129 : index
    %45 = vector.load %arg9[%c0_40, %c129] : memref<4x512xf32, #tpu.memory_space<vmem>>, vector<4x256xf32>
    %46 = vector.broadcast %12 : vector<1x256xf32> to vector<4x256xf32>
    %47 = arith.mulf %45, %46 : vector<4x256xf32>
    %c5 = arith.constant 5 : index
    %c0_41 = arith.constant 0 : index
    %c0_42 = arith.constant 0 : index
    %48 = vector.load %arg2[%c5, %c0_41, %c0_42] : memref<9x8x4xf32, #tpu.memory_space<vmem>>, vector<1x8x4xf32>
    %49 = vector.shape_cast %48 : vector<1x8x4xf32> to vector<8x4xf32>
    %cst_43 = arith.constant dense<0.000000e+00> : vector<8x256xf32>
    %50 = tpu.matmul %49, %47, %cst_43 {dimension_numbers = #tpu.dot_dimension_numbers<[1], [0], [0], [1], [0, 0, 1, 1], [], []>} : vector<8x4xf32>, vector<4x256xf32>, vector<8x256xf32> -> vector<8x256xf32>
    %51 = arith.addf %44, %50 : vector<8x256xf32>
    %c0_44 = arith.constant 0 : index
    %c143 = arith.constant 143 : index
    %52 = vector.load %arg9[%c0_44, %c143] : memref<4x512xf32, #tpu.memory_space<vmem>>, vector<4x256xf32>
    %53 = vector.broadcast %11 : vector<1x256xf32> to vector<4x256xf32>
    %54 = arith.mulf %52, %53 : vector<4x256xf32>
    %c6 = arith.constant 6 : index
    %c0_45 = arith.constant 0 : index
    %c0_46 = arith.constant 0 : index
    %55 = vector.load %arg2[%c6, %c0_45, %c0_46] : memref<9x8x4xf32, #tpu.memory_space<vmem>>, vector<1x8x4xf32>
    %56 = vector.shape_cast %55 : vector<1x8x4xf32> to vector<8x4xf32>
    %cst_47 = arith.constant dense<0.000000e+00> : vector<8x256xf32>
    %57 = tpu.matmul %56, %54, %cst_47 {dimension_numbers = #tpu.dot_dimension_numbers<[1], [0], [0], [1], [0, 0, 1, 1], [], []>} : vector<8x4xf32>, vector<4x256xf32>, vector<8x256xf32> -> vector<8x256xf32>
    %58 = arith.addf %51, %57 : vector<8x256xf32>
    %c0_48 = arith.constant 0 : index
    %c144 = arith.constant 144 : index
    %59 = vector.load %arg9[%c0_48, %c144] : memref<4x512xf32, #tpu.memory_space<vmem>>, vector<4x256xf32>
    %c7 = arith.constant 7 : index
    %c0_49 = arith.constant 0 : index
    %c0_50 = arith.constant 0 : index
    %60 = vector.load %arg2[%c7, %c0_49, %c0_50] : memref<9x8x4xf32, #tpu.memory_space<vmem>>, vector<1x8x4xf32>
    %61 = vector.shape_cast %60 : vector<1x8x4xf32> to vector<8x4xf32>
    %cst_51 = arith.constant dense<0.000000e+00> : vector<8x256xf32>
    %62 = tpu.matmul %61, %59, %cst_51 {dimension_numbers = #tpu.dot_dimension_numbers<[1], [0], [0], [1], [0, 0, 1, 1], [], []>} : vector<8x4xf32>, vector<4x256xf32>, vector<8x256xf32> -> vector<8x256xf32>
    %63 = arith.addf %58, %62 : vector<8x256xf32>
    %c0_52 = arith.constant 0 : index
    %c145 = arith.constant 145 : index
    %64 = vector.load %arg9[%c0_52, %c145] : memref<4x512xf32, #tpu.memory_space<vmem>>, vector<4x256xf32>
    %65 = vector.broadcast %12 : vector<1x256xf32> to vector<4x256xf32>
    %66 = arith.mulf %64, %65 : vector<4x256xf32>
    %c8 = arith.constant 8 : index
    %c0_53 = arith.constant 0 : index
    %c0_54 = arith.constant 0 : index
    %67 = vector.load %arg2[%c8, %c0_53, %c0_54] : memref<9x8x4xf32, #tpu.memory_space<vmem>>, vector<1x8x4xf32>
    %68 = vector.shape_cast %67 : vector<1x8x4xf32> to vector<8x4xf32>
    %cst_55 = arith.constant dense<0.000000e+00> : vector<8x256xf32>
    %69 = tpu.matmul %68, %66, %cst_55 {dimension_numbers = #tpu.dot_dimension_numbers<[1], [0], [0], [1], [0, 0, 1, 1], [], []>} : vector<8x4xf32>, vector<4x256xf32>, vector<8x256xf32> -> vector<8x256xf32>
    %70 = arith.addf %63, %69 : vector<8x256xf32>
    %c0_56 = arith.constant 0 : index
    %c0_57 = arith.constant 0 : index
    %71 = vector.load %arg3[%c0_56, %c0_57] : memref<8x1xf32, #tpu.memory_space<vmem>>, vector<8x1xf32>
    %72 = vector.broadcast %71 : vector<8x1xf32> to vector<8x256xf32>
    %73 = arith.addf %70, %72 : vector<8x256xf32>
    %cst_58 = arith.constant 0.000000e+00 : f32
    %74 = vector.broadcast %cst_58 : f32 to vector<8x256xf32>
    %75 = arith.maximumf %73, %74 : vector<8x256xf32>
    %c0_59 = arith.constant 0 : index
    %c128_60 = arith.constant 128 : index
    %76 = vector.load %arg10[%c0_59, %c128_60] : memref<8x512xf32, #tpu.memory_space<vmem>>, vector<8x256xf32>
    tpu.vector_store %arg10[%c0_59, %c128_60], %75 {strides = array<i32>} : memref<8x512xf32, #tpu.memory_space<vmem>>, vector<8x256xf32>,
    %c0_61 = arith.constant 0 : index
    %c0_62 = arith.constant 0 : index
    %77 = vector.load %arg6[%c0_61, %c0_62] : memref<2x256xf32, #tpu.memory_space<vmem>>, vector<1x256xf32>
    %c1_63 = arith.constant 1 : index
    %c0_64 = arith.constant 0 : index
    %78 = vector.load %arg6[%c1_63, %c0_64] : memref<2x256xf32, #tpu.memory_space<vmem>>, vector<1x256xf32>
    %cst_65 = arith.constant 0.000000e+00 : f32
    %79 = vector.broadcast %cst_65 : f32 to vector<8x256xf32>
    %c0_66 = arith.constant 0 : index
    %c111_67 = arith.constant 111 : index
    %80 = vector.load %arg10[%c0_66, %c111_67] : memref<8x512xf32, #tpu.memory_space<vmem>>, vector<8x256xf32>
    %81 = vector.broadcast %77 : vector<1x256xf32> to vector<8x256xf32>
    %82 = arith.mulf %80, %81 : vector<8x256xf32>
    %c0_68 = arith.constant 0 : index
    %c0_69 = arith.constant 0 : index
    %c0_70 = arith.constant 0 : index
    %83 = vector.load %arg4[%c0_68, %c0_69, %c0_70] : memref<9x8x8xf32, #tpu.memory_space<vmem>>, vector<1x8x8xf32>
    %84 = vector.shape_cast %83 : vector<1x8x8xf32> to vector<8x8xf32>
    %cst_71 = arith.constant dense<0.000000e+00> : vector<8x256xf32>
    %85 = tpu.matmul %84, %82, %cst_71 {dimension_numbers = #tpu.dot_dimension_numbers<[1], [0], [0], [1], [0, 0, 1, 1], [], []>} : vector<8x8xf32>, vector<8x256xf32>, vector<8x256xf32> -> vector<8x256xf32>
    %86 = arith.addf %79, %85 : vector<8x256xf32>
    %c0_72 = arith.constant 0 : index
    %c112_73 = arith.constant 112 : index
    %87 = vector.load %arg10[%c0_72, %c112_73] : memref<8x512xf32, #tpu.memory_space<vmem>>, vector<8x256xf32>
    %c1_74 = arith.constant 1 : index
    %c0_75 = arith.constant 0 : index
    %c0_76 = arith.constant 0 : index
    %88 = vector.load %arg4[%c1_74, %c0_75, %c0_76] : memref<9x8x8xf32, #tpu.memory_space<vmem>>, vector<1x8x8xf32>
    %89 = vector.shape_cast %88 : vector<1x8x8xf32> to vector<8x8xf32>
    %cst_77 = arith.constant dense<0.000000e+00> : vector<8x256xf32>
    %90 = tpu.matmul %89, %87, %cst_77 {dimension_numbers = #tpu.dot_dimension_numbers<[1], [0], [0], [1], [0, 0, 1, 1], [], []>} : vector<8x8xf32>, vector<8x256xf32>, vector<8x256xf32> -> vector<8x256xf32>
    %91 = arith.addf %86, %90 : vector<8x256xf32>
    %c0_78 = arith.constant 0 : index
    %c113_79 = arith.constant 113 : index
    %92 = vector.load %arg10[%c0_78, %c113_79] : memref<8x512xf32, #tpu.memory_space<vmem>>, vector<8x256xf32>
    %93 = vector.broadcast %78 : vector<1x256xf32> to vector<8x256xf32>
    %94 = arith.mulf %92, %93 : vector<8x256xf32>
    %c2_80 = arith.constant 2 : index
    %c0_81 = arith.constant 0 : index
    %c0_82 = arith.constant 0 : index
    %95 = vector.load %arg4[%c2_80, %c0_81, %c0_82] : memref<9x8x8xf32, #tpu.memory_space<vmem>>, vector<1x8x8xf32>
    %96 = vector.shape_cast %95 : vector<1x8x8xf32> to vector<8x8xf32>
    %cst_83 = arith.constant dense<0.000000e+00> : vector<8x256xf32>
    %97 = tpu.matmul %96, %94, %cst_83 {dimension_numbers = #tpu.dot_dimension_numbers<[1], [0], [0], [1], [0, 0, 1, 1], [], []>} : vector<8x8xf32>, vector<8x256xf32>, vector<8x256xf32> -> vector<8x256xf32>
    %98 = arith.addf %91, %97 : vector<8x256xf32>
    %c0_84 = arith.constant 0 : index
    %c127_85 = arith.constant 127 : index
    %99 = vector.load %arg10[%c0_84, %c127_85] : memref<8x512xf32, #tpu.memory_space<vmem>>, vector<8x256xf32>
    %100 = vector.broadcast %77 : vector<1x256xf32> to vector<8x256xf32>
    %101 = arith.mulf %99, %100 : vector<8x256xf32>
    %c3_86 = arith.constant 3 : index
    %c0_87 = arith.constant 0 : index
    %c0_88 = arith.constant 0 : index
    %102 = vector.load %arg4[%c3_86, %c0_87, %c0_88] : memref<9x8x8xf32, #tpu.memory_space<vmem>>, vector<1x8x8xf32>
    %103 = vector.shape_cast %102 : vector<1x8x8xf32> to vector<8x8xf32>
    %cst_89 = arith.constant dense<0.000000e+00> : vector<8x256xf32>
    %104 = tpu.matmul %103, %101, %cst_89 {dimension_numbers = #tpu.dot_dimension_numbers<[1], [0], [0], [1], [0, 0, 1, 1], [], []>} : vector<8x8xf32>, vector<8x256xf32>, vector<8x256xf32> -> vector<8x256xf32>
    %105 = arith.addf %98, %104 : vector<8x256xf32>
    %c0_90 = arith.constant 0 : index
    %c128_91 = arith.constant 128 : index
    %106 = vector.load %arg10[%c0_90, %c128_91] : memref<8x512xf32, #tpu.memory_space<vmem>>, vector<8x256xf32>
    %c4_92 = arith.constant 4 : index
    %c0_93 = arith.constant 0 : index
    %c0_94 = arith.constant 0 : index
    %107 = vector.load %arg4[%c4_92, %c0_93, %c0_94] : memref<9x8x8xf32, #tpu.memory_space<vmem>>, vector<1x8x8xf32>
    %108 = vector.shape_cast %107 : vector<1x8x8xf32> to vector<8x8xf32>
    %cst_95 = arith.constant dense<0.000000e+00> : vector<8x256xf32>
    %109 = tpu.matmul %108, %106, %cst_95 {dimension_numbers = #tpu.dot_dimension_numbers<[1], [0], [0], [1], [0, 0, 1, 1], [], []>} : vector<8x8xf32>, vector<8x256xf32>, vector<8x256xf32> -> vector<8x256xf32>
    %110 = arith.addf %105, %109 : vector<8x256xf32>
    %c0_96 = arith.constant 0 : index
    %c129_97 = arith.constant 129 : index
    %111 = vector.load %arg10[%c0_96, %c129_97] : memref<8x512xf32, #tpu.memory_space<vmem>>, vector<8x256xf32>
    %112 = vector.broadcast %78 : vector<1x256xf32> to vector<8x256xf32>
    %113 = arith.mulf %111, %112 : vector<8x256xf32>
    %c5_98 = arith.constant 5 : index
    %c0_99 = arith.constant 0 : index
    %c0_100 = arith.constant 0 : index
    %114 = vector.load %arg4[%c5_98, %c0_99, %c0_100] : memref<9x8x8xf32, #tpu.memory_space<vmem>>, vector<1x8x8xf32>
    %115 = vector.shape_cast %114 : vector<1x8x8xf32> to vector<8x8xf32>
    %cst_101 = arith.constant dense<0.000000e+00> : vector<8x256xf32>
    %116 = tpu.matmul %115, %113, %cst_101 {dimension_numbers = #tpu.dot_dimension_numbers<[1], [0], [0], [1], [0, 0, 1, 1], [], []>} : vector<8x8xf32>, vector<8x256xf32>, vector<8x256xf32> -> vector<8x256xf32>
    %117 = arith.addf %110, %116 : vector<8x256xf32>
    %c0_102 = arith.constant 0 : index
    %c143_103 = arith.constant 143 : index
    %118 = vector.load %arg10[%c0_102, %c143_103] : memref<8x512xf32, #tpu.memory_space<vmem>>, vector<8x256xf32>
    %119 = vector.broadcast %77 : vector<1x256xf32> to vector<8x256xf32>
    %120 = arith.mulf %118, %119 : vector<8x256xf32>
    %c6_104 = arith.constant 6 : index
    %c0_105 = arith.constant 0 : index
    %c0_106 = arith.constant 0 : index
    %121 = vector.load %arg4[%c6_104, %c0_105, %c0_106] : memref<9x8x8xf32, #tpu.memory_space<vmem>>, vector<1x8x8xf32>
    %122 = vector.shape_cast %121 : vector<1x8x8xf32> to vector<8x8xf32>
    %cst_107 = arith.constant dense<0.000000e+00> : vector<8x256xf32>
    %123 = tpu.matmul %122, %120, %cst_107 {dimension_numbers = #tpu.dot_dimension_numbers<[1], [0], [0], [1], [0, 0, 1, 1], [], []>} : vector<8x8xf32>, vector<8x256xf32>, vector<8x256xf32> -> vector<8x256xf32>
    %124 = arith.addf %117, %123 : vector<8x256xf32>
    %c0_108 = arith.constant 0 : index
    %c144_109 = arith.constant 144 : index
    %125 = vector.load %arg10[%c0_108, %c144_109] : memref<8x512xf32, #tpu.memory_space<vmem>>, vector<8x256xf32>
    %c7_110 = arith.constant 7 : index
    %c0_111 = arith.constant 0 : index
    %c0_112 = arith.constant 0 : index
    %126 = vector.load %arg4[%c7_110, %c0_111, %c0_112] : memref<9x8x8xf32, #tpu.memory_space<vmem>>, vector<1x8x8xf32>
    %127 = vector.shape_cast %126 : vector<1x8x8xf32> to vector<8x8xf32>
    %cst_113 = arith.constant dense<0.000000e+00> : vector<8x256xf32>
    %128 = tpu.matmul %127, %125, %cst_113 {dimension_numbers = #tpu.dot_dimension_numbers<[1], [0], [0], [1], [0, 0, 1, 1], [], []>} : vector<8x8xf32>, vector<8x256xf32>, vector<8x256xf32> -> vector<8x256xf32>
    %129 = arith.addf %124, %128 : vector<8x256xf32>
    %c0_114 = arith.constant 0 : index
    %c145_115 = arith.constant 145 : index
    %130 = vector.load %arg10[%c0_114, %c145_115] : memref<8x512xf32, #tpu.memory_space<vmem>>, vector<8x256xf32>
    %131 = vector.broadcast %78 : vector<1x256xf32> to vector<8x256xf32>
    %132 = arith.mulf %130, %131 : vector<8x256xf32>
    %c8_116 = arith.constant 8 : index
    %c0_117 = arith.constant 0 : index
    %c0_118 = arith.constant 0 : index
    %133 = vector.load %arg4[%c8_116, %c0_117, %c0_118] : memref<9x8x8xf32, #tpu.memory_space<vmem>>, vector<1x8x8xf32>
    %134 = vector.shape_cast %133 : vector<1x8x8xf32> to vector<8x8xf32>
    %cst_119 = arith.constant dense<0.000000e+00> : vector<8x256xf32>
    %135 = tpu.matmul %134, %132, %cst_119 {dimension_numbers = #tpu.dot_dimension_numbers<[1], [0], [0], [1], [0, 0, 1, 1], [], []>} : vector<8x8xf32>, vector<8x256xf32>, vector<8x256xf32> -> vector<8x256xf32>
    %136 = arith.addf %129, %135 : vector<8x256xf32>
    %c0_120 = arith.constant 0 : index
    %c128_121 = arith.constant 128 : index
    %137 = vector.load %arg9[%c0_120, %c128_121] : memref<4x512xf32, #tpu.memory_space<vmem>>, vector<4x256xf32>
    %c0_122 = arith.constant 0 : index
    %c0_123 = arith.constant 0 : index
    %138 = vector.load %arg7[%c0_122, %c0_123] : memref<8x4xf32, #tpu.memory_space<vmem>>, vector<8x4xf32>
    %cst_124 = arith.constant dense<0.000000e+00> : vector<8x256xf32>
    %139 = tpu.matmul %138, %137, %cst_124 {dimension_numbers = #tpu.dot_dimension_numbers<[1], [0], [0], [1], [0, 0, 1, 1], [], []>} : vector<8x4xf32>, vector<4x256xf32>, vector<8x256xf32> -> vector<8x256xf32>
    %c0_125 = arith.constant 0 : index
    %c0_126 = arith.constant 0 : index
    %140 = vector.load %arg5[%c0_125, %c0_126] : memref<8x1xf32, #tpu.memory_space<vmem>>, vector<8x1xf32>
    %141 = vector.broadcast %140 : vector<8x1xf32> to vector<8x256xf32>
    %142 = arith.addf %136, %141 : vector<8x256xf32>
    %143 = arith.addf %142, %139 : vector<8x256xf32>
    %cst_127 = arith.constant 0.000000e+00 : f32
    %144 = vector.broadcast %cst_127 : f32 to vector<8x256xf32>
    %145 = arith.maximumf %143, %144 : vector<8x256xf32>
    %c0_128 = arith.constant 0 : index
    %c0_129 = arith.constant 0 : index
    %c0_130 = arith.constant 0 : index
    %146 = vector.load %arg8[%c0_128, %c0_129, %c0_130] : memref<1x8x256xf32, #tpu.memory_space<vmem>>, vector<1x8x256xf32>
    %147 = vector.shape_cast %146 : vector<1x8x256xf32> to vector<8x256xf32>
    %148 = vector.shape_cast %145 : vector<8x256xf32> to vector<1x8x256xf32>
    tpu.vector_store %arg8[%c0_128, %c0_129, %c0_130], %148 {strides = array<i32>} : memref<1x8x256xf32, #tpu.memory_space<vmem>>, vector<1x8x256xf32>,
    return
  }
  func.func @transform_0(%arg0: i32) -> (i32, i32, i32) {
    %c0_i32 = arith.constant 0 : i32
    %c0_i32_0 = arith.constant 0 : i32
    %c0_i32_1 = arith.constant 0 : i32
    return %arg0, %c0_i32, %c0_i32_0 : i32, i32, i32
  }
  func.func @transform_1(%arg0: i32) -> (i32, i32, i32) {
    %c0_i32 = arith.constant 0 : i32
    %c0_i32_0 = arith.constant 0 : i32
    %c0_i32_1 = arith.constant 0 : i32
    %c0_i32_2 = arith.constant 0 : i32
    return %c0_i32, %c0_i32_0, %c0_i32_1 : i32, i32, i32
  }
  func.func @transform_2(%arg0: i32) -> (i32, i32) {
    %c0_i32 = arith.constant 0 : i32
    %c0_i32_0 = arith.constant 0 : i32
    %c0_i32_1 = arith.constant 0 : i32
    return %c0_i32, %c0_i32_0 : i32, i32
  }
  func.func @transform_3(%arg0: i32) -> (i32, i32, i32) {
    %c0_i32 = arith.constant 0 : i32
    %c0_i32_0 = arith.constant 0 : i32
    %c0_i32_1 = arith.constant 0 : i32
    %c0_i32_2 = arith.constant 0 : i32
    return %c0_i32, %c0_i32_0, %c0_i32_1 : i32, i32, i32
  }
  func.func @transform_4(%arg0: i32) -> (i32, i32) {
    %c0_i32 = arith.constant 0 : i32
    %c0_i32_0 = arith.constant 0 : i32
    %c0_i32_1 = arith.constant 0 : i32
    return %c0_i32, %c0_i32_0 : i32, i32
  }
  func.func @transform_5(%arg0: i32) -> (i32, i32) {
    %c0_i32 = arith.constant 0 : i32
    %c0_i32_0 = arith.constant 0 : i32
    %c0_i32_1 = arith.constant 0 : i32
    return %c0_i32, %c0_i32_0 : i32, i32
  }
  func.func @transform_6(%arg0: i32) -> (i32, i32) {
    %c0_i32 = arith.constant 0 : i32
    %c0_i32_0 = arith.constant 0 : i32
    %c0_i32_1 = arith.constant 0 : i32
    return %c0_i32, %c0_i32_0 : i32, i32
  }
  func.func @transform_7(%arg0: i32) -> (i32, i32, i32) {
    %c0_i32 = arith.constant 0 : i32
    %c0_i32_0 = arith.constant 0 : i32
    %c0_i32_1 = arith.constant 0 : i32
    return %arg0, %c0_i32, %c0_i32_0 : i32, i32, i32
  }
}

</mosaic_0001>

<bundles_post_ra>
// kernel: res_block_forward.1
= control target key start
LH: loop header
LB: loop body
LE: loop exit
PB: predicated region body
PF: predicated region fallthrough
CT: control target
= control target key end

     0   :  { %s1900_s24 = smov 0   ;;  %s2199_s0 = inlined_call_operand.vmem [shape: f32[2,4,256], index: 0, kind: input, shape index: {}]   ;;  %s2200_s1 = inlined_call_operand.vmem [shape: f32[9,8,4], index: 1, kind: input, shape index: {}]   ;;  %s2201_s2 = inlined_call_operand.vmem [shape: f32[8,1], index: 2, kind: input, shape index: {}]   ;;  %s2202_s3 = inlined_call_operand.vmem [shape: f32[9,8,8], index: 3, kind: input, shape index: {}]   ;;  %s2203_s4 = inlined_call_operand.vmem [shape: f32[8,1], index: 4, kind: input, shape index: {}]   ;;  %s2204_s5 = inlined_call_operand.vmem [shape: f32[2,256], index: 5, kind: input, shape index: {}]   ;;  %s2205_s6 = inlined_call_operand.vmem [shape: f32[8,4], index: 6, kind: input, shape index: {}]   ;;  %s2206_s7 = inlined_call_operand.vmem [shape: f32[2,8,256], index: 7, kind: output, shape index: {}]  }
   0x1 LB: > { %s1694_s25 = sadd.s32 4294967295, %s1848_s24   ;;  %p1698_p0 = scmp.ge.s32.totalorder %s1848_s24, 1  ;;  %s1848_s24 = sphi %s1900_s24, %s17_s24  }
   0x2   : > { %p237_p1 = scmp.lt.s32.totalorder %s1848_s24, 3 }
   0x4   : > { %p238_p2 = pnand %p1698_p0, %p237_p1 }
   0x5   : > { %s1850_s30 = smov (!%p238_p2), 111   ;;  %s1851_s8 = smov (!%p238_p2), 127  }
   0x6   : > { %241 = sbr.rel (%p238_p2) target bundleno = 746 (0x2ea), region = 48  ;;  %s1852_s9 = smov (!%p238_p2), 15  }
   0x7   : > { %s1853_s10 = smov (!%p238_p2), 113   ;;  %s1854_s11 = smov (!%p238_p2), 1  }
   0x8   : > { %s1855_s12 = smov (!%p238_p2), 17   ;;  %p269_p3 = scmp.lt.s32.totalorder (!%p238_p2), %s1694_s25, 1 }
   0x9   : > { %s1857_s17 = smov (!%p238_p2), 16   ;;  %s1858_s18 = smov (!%p238_p2), 112  }
   0xb   : > { %v285_v0 = vld [vmem:[%s2204_s5] ss:$2 sm:$0x3]  ;;  %v1703_v3 = vld [vmem:[%s2204_s5 + $0x1] ss:$2 sm:$0x3] }
   0xc   : > { %v291_v1 = vperm.slane %v285_v0, 0  ;;  %v292_v2 = vperm.slane %v285_v0, 1  ;;  %vm294_vm0 = vcmask 1043456   ;;  %v441_v5 = vperm.slane %v1703_v3, 1  ;;  %s2208_s25 = smov (!%p269_p3, %s1694_s25), 1 }
   0xd   : > { %v440_v7 = vperm.slane %v1703_v3, 0  ;;  %s1781_s13 = sshll.u32 %s2208_s25, 3  ;;  %v1856_v11 = vmov 0.0   ;;  %vm299_vm1 = vcmask 908288   ;;  %vm447_vm2 = vcmask 924672  }
   0xe   : > { %v293_v4 = vrot.slane %v292_v2, 4  ;;  %v442_v8 = vrot.slane %v441_v5, 4  ;;  %s273_s16 = scalar_lea.vmem %s2199_s0, %s1781_s13  ;;  %279 = vst [vmem:[#allocation2] sm:$0xf] %v1856_v11  ;;  %vm526_vm3 = vcmask 1039360   ;;  %vm548_vm4 = vcmask 7168  }
   0xf   : > { %v1928_v10 = vld [vmem:[%s273_s16] sm:$0xff]  ;;  %280 = vst [vmem:[#allocation2 + $0xc] sm:$0xf] %v1856_v11  ;;  %vm469_vm5 = vcmask 121856   ;;  %vm387_vm6 = vcmask 138240   ;;  %vm322_vm7 = vcmask 130048  }
  0x10   : > { %v295_v6 = vsel %vm294_vm0, %v291_v1, %v293_v4  ;;  %v443_v9 = vsel %vm294_vm0, %v440_v7, %v442_v8  ;;  %284 = vst [vmem:[#allocation2 + $0x4] sm:$0xff] %v1928_v10  ;;  %vm325_vm8 = vcmask 31744   ;;  %vm828_vm9 = vcmask 916480  }
  0x11   : > { %296 = vrot.lane.b32.xlu0 %v295_v6, %s1850_s30  ;;  %523 = vrot.lane.b32.xlu1 %v295_v6, %s1851_s8  ;;  %vm1004_vm10 = vcmask 64512  }
  0x12   : > { %735 = vrot.lane.b32.xlu2 %v295_v6, %s1852_s9 }
  0x16   : > { %v657_v39 = vld [vmem:[#allocation2 + $0xc] sm:$0xf] }
  0x17   : > { %v289_v12 = vld [vmem:[#allocation2 + $0x8] sm:$0xf]  ;;  %v288_v13 = vld [vmem:[#allocation2] sm:$0xff]  ;;  %v734_v46 = vld [vmem:[#allocation2 + $0xc] sm:$0xf] }
  0x18   : > { %312 = vst [vmem:[#allocation1 + $0x10] ss:$2 sm:$0xff] %v289_v12  ;;  %v438_v23 = vld [vmem:[#allocation2 + $0x8] sm:$0xf]  ;;  %v811_v57 = vld [vmem:[#allocation2 + $0xc] sm:$0xf] }
  0x19   : > { %444 = vrot.lane.b32.xlu0 %v443_v9, %s1853_s10  ;;  %658 = vrot.lane.b32.xlu1 %v443_v9, %s1854_s11  ;;  %310 = vst [vmem:[#allocation1] ss:$2 sm:$0xff] %v288_v13  ;;  %v522_v31 = vld [vmem:[#allocation2 + $0x8] sm:$0xf]  ;;  %v881_v61 = vld [vmem:[#allocation2 + $0xc] sm:$0xf] }
  0x1a   : > { %882 = vrot.lane.b32.xlu2 %v443_v9, %s1855_s12 }
  0x1f   : > { %v315_v14 = vld.sshfl [vmem:[#allocation1 + $0x10] sm:$0xff pattern:$0x75316420] }
  0x20   : > { %v313_v15 = vld.sshfl [vmem:[#allocation1] sm:$0xff pattern:$0x75316420]  ;;  %v314_v16 = vld.sshfl [vmem:[#allocation1 + $0x8] sm:$0xff pattern:$0x75316420] }
  0x21   : > { %318 = vrot.lane.b32.xlu1 %v314_v16, %s1857_s17  ;;  %316 = vrot.lane.b32.xlu0 %v313_v15, %s1857_s17 }
  0x22   : > { %320 = vrot.lane.b32.xlu2 %v315_v14, %s1857_s17 }
  0x6c   : > { %v736_v45 = vpop.permute.xlu2 %735 }
  0x6d   : > { %v737_v49 = vrot.slane %v736_v45, 4 }
  0x6f   : > { %v742_v50 = vmul.f32 %v737_v49, %v734_v46  ;;  %v738_v56 = vsel %vm469_vm5, %v737_v49, %v736_v45  ;;  %v1728_v49 = vld [vmem:[%s2200_s1 + $0x28] sm:$0xff] }
  0x70   : > { %v741_v60 = vmul.f32 %v738_v56, %v1928_v10 }
  0x74   : > { %v883_v59 = vpop.permute.xlu2 %882 }
  0x75   : > { %v884_v0 = vrot.slane %v883_v59, 4 }
  0x77   : > { %v889_v1 = vmul.f32 %v884_v0, %v881_v61  ;;  %v885_v5 = vsel %vm387_vm6, %v884_v0, %v883_v59  ;;  %v1738_v61 = vld [vmem:[%s2200_s1 + $0x38] sm:$0xff] }
  0x78   : > { %v888_v7 = vmul.f32 %v885_v5, %v1928_v10 }
  0x7c   : > { %v321_v14 = vpop.permute.xlu2 %320 }
  0x83   : > { %v297_v17 = vpop.permute.xlu0 %296  ;;  %v524_v27 = vpop.permute.xlu1 %523 }
  0x84   : > { %v298_v18 = vrot.slane %v297_v17, 4  ;;  %v525_v32 = vrot.slane %v524_v27, 4 }
  0x86   : > { %v300_v19 = vsel %vm299_vm1, %v298_v18, %v297_v17  ;;  %v304_v20 = vmul.f32 %v298_v18, %v289_v12  ;;  %v531_v34 = vmul.f32 %v525_v32, %v522_v31  ;;  %v527_v35 = vsel %vm526_vm3, %v525_v32, %v524_v27 }
  0x87   : > { %v303_v21 = vmul.f32 %v300_v19, %v288_v13  ;;  %v530_v38 = vmul.f32 %v527_v35, %v288_v13  ;;  %v1704_v19 = vld [vmem:[%s2200_s1 + $0x8] sm:$0xff] }
  0x88   : > { %377 = vst [vmem:[#allocation1 + $0x10] ss:$2 sm:$0xff] %v304_v20 }
  0x89   : > { %375 = vst [vmem:[#allocation1] ss:$2 sm:$0xff] %v303_v21 }
  0x8b   : > { %v445_v22 = vpop.permute.xlu0 %444  ;;  %v659_v37 = vpop.permute.xlu1 %658 }
  0x8c   : > { %v446_v24 = vrot.slane %v445_v22, 4  ;;  %v660_v42 = vrot.slane %v659_v37, 4 }
  0x8e   : > { %v448_v25 = vsel %vm447_vm2, %v446_v24, %v445_v22  ;;  %v452_v26 = vmul.f32 %v446_v24, %v438_v23  ;;  %v665_v43 = vmul.f32 %v660_v42, %v657_v39  ;;  %v661_v51 = vsel %vm548_vm4, %v660_v42, %v659_v37  ;;  %v305_v23 = vld [vmem:[%s2200_s1] sm:$0xff] }
  0x8f   : > { %v380_v28 = vld.sshfl [vmem:[#allocation1 + $0x10] sm:$0xff pattern:$0x75316420]  ;;  %v451_v29 = vmul.f32 %v448_v25, %v288_v13  ;;  %v664_v53 = vmul.f32 %v661_v51, %v1928_v10  ;;  %v969_v37 = vld [vmem:[%s2204_s5] ss:$2 sm:$0x3] }
  0x90   : > { %459 = vst [vmem:[#allocation1 + $0x10] ss:$2 sm:$0xff] %v452_v26  ;;  %385 = vrot.lane.b32.xlu2 %v380_v28, %s1855_s12  ;;  %v379_v30 = vld.sshfl [vmem:[#allocation1 + $0x8] sm:$0xff pattern:$0x75316420]  ;;  %v1713_v28 = vld [vmem:[%s2200_s1 + $0x10] sm:$0xff] }
  0x91   : > { %383 = vrot.lane.b32.xlu1 %v379_v30, %s1855_s12  ;;  %v378_v33 = vld.sshfl [vmem:[#allocation1] sm:$0xff pattern:$0x75316420]  ;;  %v976_v45 = vperm.slane %v969_v37, 1 }
  0x92   : > { %381 = vrot.lane.b32.xlu0 %v378_v33, %s1855_s12  ;;  %457 = vst [vmem:[#allocation1] ss:$2 sm:$0xff] %v451_v29  ;;  %v1748_v29 = vld [vmem:[%s2204_s5 + $0x1] ss:$2 sm:$0x3] }
  0x93   : > { %v319_v15 = vpop.permute.xlu1 %318  ;;  %v317_v16 = vpop.permute.xlu0 %316  ;;  %v1105_v32 = vperm.slane %v1748_v29, 0  ;;  %v957_v42 = vld [vmem:[%s2201_s2] sm:$0xff]  ;;  %v1106_v46 = vperm.slane %v1748_v29, 1 }
  0x94   : > { %v323_v17 = vsel %vm322_vm7, %v317_v16, %v319_v15  ;;  %v324_v18 = vsel %vm322_vm7, %v319_v15, %v321_v14 }
  0x95   : > { %1705 = vmatpush.msk.msra.mxu0 %vm294_vm0, %v323_v17  ;;  %1707 = vmatpush.msk.msra.mxu1 %vm294_vm0, %v324_v18 }
  0x96   : > { %1706 = vmatmul.msk.f32.vlgmr.msra.gmra.mxu0 %vm325_vm8, %v1704_v19  ;;  %1708 = vmatmul.msk.f32.vlgmr.msra.gmra.mxu1 %vm325_vm8, %v1704_v19 }
  0x97   : > { %v462_v36 = vld.sshfl [vmem:[#allocation1 + $0x10] sm:$0xff pattern:$0x75316420] }
  0x98   : > { %467 = vrot.lane.b32.xlu2 %v462_v36, %s1852_s9  ;;  %538 = vst [vmem:[#allocation1 + $0x10] ss:$2 sm:$0xff] %v531_v34  ;;  %v1718_v36 = vld [vmem:[%s2200_s1 + $0x18] sm:$0xff] }
  0x99   : > { %v461_v40 = vld.sshfl [vmem:[#allocation1 + $0x8] sm:$0xff pattern:$0x75316420]  ;;  %v460_v41 = vld.sshfl [vmem:[#allocation1] sm:$0xff pattern:$0x75316420] }
  0x9a   : > { %465 = vrot.lane.b32.xlu1 %v461_v40, %s1852_s9  ;;  %463 = vrot.lane.b32.xlu0 %v460_v41, %s1852_s9  ;;  %536 = vst [vmem:[#allocation1] ss:$2 sm:$0xff] %v530_v38  ;;  %v1723_v40 = vld [vmem:[%s2200_s1 + $0x20] sm:$0xff]  ;;  %v975_v41 = vperm.slane %v969_v37, 0 }
  0x9f   : > { %v541_v44 = vld.sshfl [vmem:[#allocation1 + $0x10] sm:$0xff pattern:$0x75316420] }
  0xa0   : > { %546 = vrot.lane.b32.xlu2 %v541_v44, %s1854_s11  ;;  %672 = vst [vmem:[#allocation1 + $0x10] ss:$2 sm:$0xff] %v665_v43  ;;  %v1859_v43 = vmov 0  }
  0xa1   : > { %v540_v47 = vld.sshfl [vmem:[#allocation1 + $0x8] sm:$0xff pattern:$0x75316420]  ;;  %v539_v48 = vld.sshfl [vmem:[#allocation1] sm:$0xff pattern:$0x75316420]  ;;  %1801 = vset.pattern.permute.xlu0 %v1859_v43 }
  0xa2   : > { %544 = vrot.lane.b32.xlu1 %v540_v47, %s1854_s11  ;;  %542 = vrot.lane.b32.xlu0 %v539_v48, %s1854_s11  ;;  %604 = vst [vmem:[#allocation1] ss:$2 sm:$0xff] %v1928_v10 }
  0xa7   : > { %v675_v52 = vld.sshfl [vmem:[#allocation1 + $0x10] sm:$0xff pattern:$0x75316420] }
  0xa8   : > { %680 = vrot.lane.b32.xlu2 %v675_v52, %s1851_s8  ;;  %749 = vst [vmem:[#allocation1 + $0x10] ss:$2 sm:$0xff] %v742_v50 }
  0xa9   : > { %v1952_v54 = vld.sshfl [vmem:[#allocation1] sm:$0xff pattern:$0x75316420]  ;;  %v1954_v55 = vld.sshfl [vmem:[#allocation1 + $0x8] sm:$0xff pattern:$0x75316420] }
  0xaa   : > { %670 = vst [vmem:[#allocation1] ss:$2 sm:$0xff] %v664_v53 }
  0xaf   : > { %v752_v58 = vld.sshfl [vmem:[#allocation1 + $0x10] sm:$0xff pattern:$0x75316420] }
  0xb0   : > { %757 = vrot.lane.b32.xlu2 %v752_v58, %s1853_s10  ;;  %818 = vst [vmem:[#allocation1 + $0x10] ss:$2 sm:$0xff] %v811_v57 }
  0xb1   : > { %v674_v62 = vld.sshfl [vmem:[#allocation1 + $0x8] sm:$0xff pattern:$0x75316420]  ;;  %v673_v63 = vld.sshfl [vmem:[#allocation1] sm:$0xff pattern:$0x75316420] }
  0xb2   : > { %678 = vrot.lane.b32.xlu1 %v674_v62, %s1851_s8  ;;  %676 = vrot.lane.b32.xlu0 %v673_v63, %s1851_s8  ;;  %747 = vst [vmem:[#allocation1] ss:$2 sm:$0xff] %v741_v60 }
  0xb7   : > { %v821_v2 = vld.sshfl [vmem:[#allocation1 + $0x10] sm:$0xff pattern:$0x75316420] }
  0xb8   : > { %826 = vrot.lane.b32.xlu2 %v821_v2, %s1858_s18  ;;  %896 = vst [vmem:[#allocation1 + $0x10] ss:$2 sm:$0xff] %v889_v1 }
  0xb9   : > { %v751_v3 = vld.sshfl [vmem:[#allocation1 + $0x8] sm:$0xff pattern:$0x75316420]  ;;  %v750_v4 = vld.sshfl [vmem:[#allocation1] sm:$0xff pattern:$0x75316420] }
  0xba   : > { %755 = vrot.lane.b32.xlu1 %v751_v3, %s1853_s10  ;;  %753 = vrot.lane.b32.xlu0 %v750_v4, %s1853_s10  ;;  %816 = vst [vmem:[#allocation1] ss:$2 sm:$0xff] %v1928_v10  ;;  %v1743_v3 = vld [vmem:[%s2200_s1 + $0x40] sm:$0xff] }
  0xbf   : > { %v899_v6 = vld.sshfl [vmem:[#allocation1 + $0x10] sm:$0xff pattern:$0x75316420] }
  0xc0   : > { %904 = vrot.lane.b32.xlu2 %v899_v6, %s1850_s30 }
  0xc1   : > { %v820_v8 = vld.sshfl [vmem:[#allocation1 + $0x8] sm:$0xff pattern:$0x75316420]  ;;  %v819_v9 = vld.sshfl [vmem:[#allocation1] sm:$0xff pattern:$0x75316420] }
  0xc2   : > { %824 = vrot.lane.b32.xlu1 %v820_v8, %s1858_s18  ;;  %822 = vrot.lane.b32.xlu0 %v819_v9, %s1858_s18  ;;  %894 = vst [vmem:[#allocation1] ss:$2 sm:$0xff] %v888_v7 }
  0xc8   : > { %1109 = vrot.lane.b32.xlu2 %v1106_v46, %s1853_s10 }
  0xc9   : > { %v898_v12 = vld.sshfl [vmem:[#allocation1 + $0x8] sm:$0xff pattern:$0x75316420]  ;;  %v897_v13 = vld.sshfl [vmem:[#allocation1] sm:$0xff pattern:$0x75316420] }
  0xca   : > { %902 = vrot.lane.b32.xlu1 %v898_v12, %s1850_s30  ;;  %900 = vrot.lane.b32.xlu0 %v897_v13, %s1850_s30  ;;  %1575 = vst [vmem:[#allocation1] ss:$2 sm:$0xff] %v1928_v10 }
  0xd0   : > { %979 = vrot.lane.b32.xlu2 %v976_v45, %s1850_s30 }
  0xd2   : > { %1107 = vrot.lane.b32.xlu1 %v1105_v32, %s1853_s10  ;;  %960 = vperm.xlu0 %1801, %v957_v42  }
  0xd8   : > { %1370 = vrot.lane.b32.xlu2 %v975_v41, %s1852_s9 }
  0xda   : > { %977 = vrot.lane.b32.xlu1 %v975_v41, %s1850_s30  ;;  %1178 = vrot.lane.b32.xlu0 %v975_v41, %s1851_s8 }
  0xe0   : > { %1301 = vrot.lane.b32.xlu2 %v1106_v46, %s1854_s11 }
  0xe2   : > { %1180 = vrot.lane.b32.xlu1 %v976_v45, %s1851_s8  ;;  %1372 = vrot.lane.b32.xlu0 %v976_v45, %s1852_s9 }
  0xea   : > { %v386_v10 = vpop.permute.xlu2 %385  ;;  %1299 = vrot.lane.b32.xlu1 %v1105_v32, %s1854_s11  ;;  %1501 = vrot.lane.b32.xlu0 %v1105_v32, %s1855_s12 }
  0xf2   : > { %v468_v25 = vpop.permute.xlu2 %467  ;;  %1503 = vrot.lane.b32.xlu1 %v1106_v46, %s1855_s12 }
  0xfa   : > { %v547_v33 = vpop.permute.xlu2 %546 }
 0x102   : > { %v681_v44 = vpop.permute.xlu2 %680 }
 0x103   : > { %v384_v20 = vpop.permute.xlu1 %383 }
 0x104   : > { %v382_v21 = vpop.permute.xlu0 %381  ;;  %v389_v22 = vsel %vm387_vm6, %v384_v20, %v386_v10 }
 0x105   : > { %v388_v24 = vsel %vm387_vm6, %v382_v21, %v384_v20  ;;  %1711 = vmatpush.msk.msra.mxu3 %vm294_vm0, %v389_v22 }
 0x106   : > { %1709 = vmatpush.msk.msra.mxu2 %vm294_vm0, %v388_v24  ;;  %1712 = vmatmul.msk.f32.vlgmr.msra.gmra.mxu3 %vm325_vm8, %v305_v23 }
 0x107   : > { %1710 = vmatmul.msk.f32.vlgmr.msra.gmra.mxu2 %vm325_vm8, %v305_v23 }
 0x10a   : > { %v758_v52 = vpop.permute.xlu2 %757 }
 0x10c   : > { %v466_v26 = vpop.permute.xlu1 %465  ;;  %v464_v27 = vpop.permute.xlu0 %463 }
 0x10d   : > { %v470_v30 = vsel %vm469_vm5, %v464_v27, %v466_v26  ;;  %v471_v31 = vsel %vm469_vm5, %v466_v26, %v468_v25 }
 0x10e   : > { %1714 = vmatpush.msk.msrb.mxu0 %vm294_vm0, %v470_v30  ;;  %1716 = vmatpush.msk.msrb.mxu1 %vm294_vm0, %v471_v31 }
 0x10f   : > { %1715 = vmatmul.msk.f32.vlgmr.msrb.gmra.mxu0 %vm325_vm8, %v1713_v28  ;;  %1717 = vmatmul.msk.f32.vlgmr.msrb.gmra.mxu1 %vm325_vm8, %v1713_v28 }
 0x110   : > { %1724 = vmatpush.msk.msra.mxu0 %vm294_vm0, %v1952_v54  ;;  %1726 = vmatpush.msk.msra.mxu1 %vm294_vm0, %v1954_v55  ;;  %v1733_v55 = vld [vmem:[%s2200_s1 + $0x30] sm:$0xff] }
 0x112   : > { %v827_v58 = vpop.permute.xlu2 %826 }
 0x113   : > { %v370_v6 = vpop.f32.mrf.mxu1  ;;  %v350_v7 = vpop.f32.mrf.mxu0 }
 0x114   : > { %v545_v34 = vpop.permute.xlu1 %544  ;;  %v543_v35 = vpop.permute.xlu0 %542 }
 0x115   : > { %v549_v38 = vsel %vm548_vm4, %v543_v35, %v545_v34  ;;  %v550_v39 = vsel %vm548_vm4, %v545_v34, %v547_v33 }
 0x116   : > { %1719 = vmatpush.msk.msrb.mxu2 %vm294_vm0, %v549_v38  ;;  %1721 = vmatpush.msk.msrb.mxu3 %vm294_vm0, %v550_v39 }
 0x117   : > { %1720 = vmatmul.msk.f32.vlgmr.msrb.gmra.mxu2 %vm325_vm8, %v1718_v36  ;;  %1722 = vmatmul.msk.f32.vlgmr.msrb.gmra.mxu3 %vm325_vm8, %v1718_v36 }
 0x118   : > { %1725 = vmatmul.msk.f32.vlgmr.msra.gmra.mxu0 %vm325_vm8, %v1723_v40  ;;  %1727 = vmatmul.msk.f32.vlgmr.msra.gmra.mxu1 %vm325_vm8, %v1723_v40 }
 0x11a   : > { %v905_v0 = vpop.permute.xlu2 %904 }
 0x122   : > { %v1110_v24 = vpop.permute.xlu2 %1109 }
 0x124   : > { %v679_v47 = vpop.permute.xlu1 %678  ;;  %v677_v48 = vpop.permute.xlu0 %676 }
 0x125   : > { %v683_v50 = vsel %vm526_vm3, %v679_v47, %v681_v44  ;;  %v682_v51 = vsel %vm526_vm3, %v677_v48, %v679_v47 }
 0x126   : > { %1729 = vmatpush.msk.msra.mxu2 %vm294_vm0, %v682_v51  ;;  %1731 = vmatpush.msk.msra.mxu3 %vm294_vm0, %v683_v50 }
 0x127   : > { %1730 = vmatmul.msk.f32.vlgmr.msra.gmra.mxu2 %vm325_vm8, %v1728_v49  ;;  %1732 = vmatmul.msk.f32.vlgmr.msra.gmra.mxu3 %vm325_vm8, %v1728_v49 }
 0x12a   : > { %v980_v39 = vpop.permute.xlu2 %979 }
 0x12c   : > { %v756_v53 = vpop.permute.xlu1 %755  ;;  %v754_v54 = vpop.permute.xlu0 %753 }
 0x12d   : > { %v760_v56 = vsel %vm447_vm2, %v756_v53, %v758_v52  ;;  %v759_v57 = vsel %vm447_vm2, %v754_v54, %v756_v53 }
 0x12e   : > { %1734 = vmatpush.msk.msrb.mxu0 %vm294_vm0, %v759_v57  ;;  %1736 = vmatpush.msk.msrb.mxu1 %vm294_vm0, %v760_v56 }
 0x12f   : > { %1737 = vmatmul.msk.f32.vlgmr.msrb.gmra.mxu1 %vm325_vm8, %v1733_v55  ;;  %1735 = vmatmul.msk.f32.vlgmr.msrb.gmra.mxu0 %vm325_vm8, %v1733_v55 }
 0x134   : > { %v825_v59 = vpop.permute.xlu1 %824  ;;  %v823_v60 = vpop.permute.xlu0 %822 }
 0x135   : > { %v830_v62 = vsel %vm828_vm9, %v825_v59, %v827_v58  ;;  %v829_v63 = vsel %vm828_vm9, %v823_v60, %v825_v59  ;;  %v1371_v58 = vpop.permute.xlu2 %1370 }
 0x136   : > { %1739 = vmatpush.msk.msrb.mxu2 %vm294_vm0, %v829_v63  ;;  %1741 = vmatpush.msk.msrb.mxu3 %vm294_vm0, %v830_v62 }
 0x137   : > { %1740 = vmatmul.msk.f32.vlgmr.msrb.gmra.mxu2 %vm325_vm8, %v1738_v61  ;;  %1742 = vmatmul.msk.f32.vlgmr.msrb.gmra.mxu3 %vm325_vm8, %v1738_v61 }
 0x13c   : > { %v903_v1 = vpop.permute.xlu1 %902  ;;  %v901_v2 = vpop.permute.xlu0 %900 }
 0x13d   : > { %v907_v4 = vsel %vm299_vm1, %v903_v1, %v905_v0  ;;  %v906_v5 = vsel %vm299_vm1, %v901_v2, %v903_v1 }
 0x13e   : > { %1744 = vmatpush.msk.msra.mxu0 %vm294_vm0, %v906_v5  ;;  %1746 = vmatpush.msk.msra.mxu1 %vm294_vm0, %v907_v4 }
 0x13f   : > { %1747 = vmatmul.msk.f32.vlgmr.msra.gmra.mxu1 %vm325_vm8, %v1743_v3  ;;  %1745 = vmatmul.msk.f32.vlgmr.msra.gmra.mxu0 %vm325_vm8, %v1743_v3  ;;  %v1302_v3 = vpop.permute.xlu2 %1301 }
 0x144   : > { %v1108_v23 = vpop.permute.xlu1 %1107  ;;  %v961_v33 = vpop.permute.xlu0 %960 }
 0x145   : > { %v1111_v48 = vsel %vm447_vm2, %v1108_v23, %v1110_v24  ;;  %v1115_v51 = vmul.f32 0.0, %v1108_v23 }
 0x14c   : > { %v978_v38 = vpop.permute.xlu1 %977  ;;  %v1179_v54 = vpop.permute.xlu0 %1178 }
 0x14d   : > { %v981_v52 = vsel %vm299_vm1, %v978_v38, %v980_v39  ;;  %v985_v56 = vmul.f32 0.0, %v978_v38 }
 0x154   : > { %v1181_v57 = vpop.permute.xlu1 %1180  ;;  %v1373_v63 = vpop.permute.xlu0 %1372 }
 0x155   : > { %v1374_v2 = vsel %vm469_vm5, %v1371_v58, %v1373_v63  ;;  %v1380_v4 = vmul.f32 0.0, %v1373_v63  ;;  %v1766_v63 = vld [vmem:[%s2202_s3 + $0x30] sm:$0xff] }
 0x15c   : > { %v1300_v1 = vpop.permute.xlu1 %1299 }
 0x189   : > { %v434_v8 = vpop.f32.mrf.mxu3 }
 0x18a   : > { %v414_v9 = vpop.f32.mrf.mxu2  ;;  %v435_v15 = vadd.f32 %v434_v8, %v370_v6  ;;  %v1303_v6 = vsel %vm548_vm4, %v1300_v1, %v1302_v3 }
 0x18b   : > { %v415_v14 = vadd.f32 %v414_v9, %v350_v7  ;;  %v1182_v9 = vsel %vm526_vm3, %v1179_v54, %v1181_v57 }
 0x18c   : > { %v516_v12 = vpop.f32.mrf.mxu1  ;;  %v496_v13 = vpop.f32.mrf.mxu0 }
 0x18d   : > { %v519_v19 = vadd.f32 %v496_v13, %v415_v14  ;;  %v520_v10 = vadd.f32 %v516_v12, %v435_v15  ;;  %v1186_v15 = vmul.f32 0.0, %v1179_v54 }
 0x195   : > { %v651_v18 = vpop.f32.mrf.mxu1  ;;  %v631_v20 = vpop.f32.mrf.mxu0 }
 0x19a   : > { %v595_v16 = vpop.f32.mrf.mxu3  ;;  %v575_v17 = vpop.f32.mrf.mxu2 }
 0x19b   : > { %v598_v21 = vadd.f32 %v575_v17, %v519_v19  ;;  %v599_v22 = vadd.f32 %v595_v16, %v520_v10  ;;  %v1504_v17 = vpop.permute.xlu1 %1503 }
 0x19d   : > { %v654_v27 = vadd.f32 %v631_v20, %v598_v21  ;;  %v655_v28 = vadd.f32 %v651_v18, %v599_v22  ;;  %v1502_v18 = vpop.permute.xlu0 %1501  ;;  %v1309_v21 = vmul.f32 0.0, %v1302_v3  ;;  %v1511_v22 = vmul.f32 0.0, %v1504_v17 }
 0x19e   : > { %v1505_v20 = vsel %vm387_vm6, %v1502_v18, %v1504_v17 }
 0x1aa   : > { %v708_v25 = vpop.f32.mrf.mxu2  ;;  %v728_v26 = vpop.f32.mrf.mxu3 }
 0x1ab   : > { %v731_v31 = vadd.f32 %v708_v25, %v654_v27  ;;  %v732_v32 = vadd.f32 %v728_v26, %v655_v28  ;;  %v1625_v27 = vld [vmem:[%s2203_s4] sm:$0xff] }
 0x1ac   : > { %v785_v29 = vpop.f32.mrf.mxu0  ;;  %v805_v30 = vpop.f32.mrf.mxu1 }
 0x1ad   : > { %v808_v34 = vadd.f32 %v785_v29, %v731_v31  ;;  %v809_v35 = vadd.f32 %v805_v30, %v732_v32  ;;  %v1749_v31 = vld [vmem:[%s2202_s3 + $0x8] sm:$0xff] }
 0x1ba   : > { %v855_v36 = vpop.f32.mrf.mxu2  ;;  %v875_v37 = vpop.f32.mrf.mxu3 }
 0x1bb   : > { %v878_v40 = vadd.f32 %v855_v36, %v808_v34  ;;  %v879_v41 = vadd.f32 %v875_v37, %v809_v35 }
 0x1bc   : > { %v932_v42 = vpop.f32.mrf.mxu0  ;;  %v952_v43 = vpop.f32.mrf.mxu1 }
 0x1bd   : > { %v955_v44 = vadd.f32 %v932_v42, %v878_v40  ;;  %v956_v45 = vadd.f32 %v952_v43, %v879_v41  ;;  %v1754_v40 = vld [vmem:[%s2202_s3 + $0x10] sm:$0xff] }
 0x1bf   : > { %v963_v46 = vadd.f32 %v961_v33, %v955_v44  ;;  %v964_v47 = vadd.f32 %v961_v33, %v956_v45 }
 0x1c1   : > { %v2076_v49 = vmax.f32 %v963_v46, 0.0  ;;  %v2078_v50 = vmax.f32 %v964_v47, 0.0 }
 0x1c3   : > { %998 = vrot.lane.b32.xlu0 %v2078_v50, %s1857_s17  ;;  %v1802_v53 = vpack.i.bf16 %v2076_v49, %v1856_v11  ;;  %v1116_v55 = vmul.f32 %v1111_v48, %v2076_v49  ;;  %v986_v59 = vmul.f32 %v981_v52, %v2076_v49  ;;  %v1117_v62 = vmul.f32 %v1110_v24, %v2078_v50  ;;  %v988_v48 = vld [vmem:[%s2202_s3] sm:$0xff] }
 0x1c4   : > { %v987_v0 = vmul.f32 %v980_v39, %v2078_v50  ;;  %v1188_v5 = vmul.f32 %v1181_v57, %v2078_v50  ;;  %v1378_v7 = vmul.f32 %v1371_v58, %v2076_v49  ;;  %v1379_v8 = vmul.f32 %v1374_v2, %v2078_v50 }
 0x1c5   : > { %1803 = vrot.lane.b32.xlu2 %v1802_v53, %s1857_s17  ;;  %v1807_v60 = vpack.i.bf16 %v1116_v55, %v1115_v51  ;;  %v1812_v61 = vpack.i.bf16 %v986_v59, %v985_v56  ;;  %v1308_v12 = vmul.f32 %v1303_v6, %v2078_v50  ;;  %v1307_v13 = vmul.f32 %v1300_v1, %v2076_v49  ;;  %v1757_v56 = vld [vmem:[%s2202_s3 + $0x18] sm:$0xff]  ;;  %v1763_v6 = vld [vmem:[%s2202_s3 + $0x28] sm:$0xff] }
 0x1c6   : > { %v1822_v14 = vpack.i.bf16 %v1379_v8, %v1378_v7  ;;  %v1187_v16 = vmul.f32 %v1182_v9, %v2076_v49  ;;  %v1509_v23 = vmul.f32 %v1502_v18, %v2076_v49  ;;  %v1510_v24 = vmul.f32 %v1505_v20, %v2078_v50 }
 0x1c7   : > { %1808 = vrot.lane.b32.xlu1 %v1807_v60, %s1852_s9  ;;  %v1827_v19 = vpack.i.bf16 %v1308_v12, %v1307_v13  ;;  %v1837_v26 = vpack.i.bf16 %v2078_v50, %v2076_v49  ;;  %v1772_v12 = vld [vmem:[%s2202_s3 + $0x40] sm:$0xff] }
 0x1c8   : > { %v1817_v10 = vpack.i.bf16 %v1187_v16, %v1186_v15  ;;  %v1832_v25 = vpack.i.bf16 %v1510_v24, %v1509_v23  ;;  %v1573_v23 = vld [vmem:[%s2205_s6] sm:$0xff] }
 0x1cb   : > { %1813 = vrot.lane.b32.xlu0 %v1812_v61, %s1855_s12 }
 0x1cd   : > { %1127 = vrot.lane.b32.xlu2 %v1117_v62, %s1852_s9 }
 0x1cf   : > { %1055 = vrot.lane.b32.xlu1 %v987_v0, %s1855_s12 }
 0x1d3   : > { %1198 = vrot.lane.b32.xlu0 %v1188_v5, %s1854_s11 }
 0x1d5   : > { %1390 = vrot.lane.b32.xlu2 %v1380_v4, %s1853_s10 }
 0x1d7   : > { %1823 = vrot.lane.b32.xlu1 %v1822_v14, %s1853_s10  ;;  %s1782_s10 = sshll.u32 %s2208_s25, 4 }
 0x1db   : > { %1828 = vrot.lane.b32.xlu0 %v1827_v19, %s1851_s8  ;;  %v1769_v19 = vld [vmem:[%s2202_s3 + $0x38] sm:$0xff] }
 0x1dd   : > { %1818 = vrot.lane.b32.xlu2 %v1817_v10, %s1854_s11 }
 0x1df   : > { %1319 = vrot.lane.b32.xlu1 %v1309_v21, %s1851_s8  ;;  %v1576_v21 = vld.sshfl [vmem:[#allocation1] sm:$0xff pattern:$0x75316420] }
 0x1e3   : > { %1521 = vrot.lane.b32.xlu0 %v1511_v22, %s1850_s30  ;;  %v1577_v22 = vld.sshfl [vmem:[#allocation1 + $0x8] sm:$0xff pattern:$0x75316420] }
 0x1e5   : > { %1833 = vrot.lane.b32.xlu2 %v1832_v25, %s1850_s30  ;;  %s278_s30 = scalar_lea.vmem %s2206_s7, %s1782_s10 }
 0x1e7   : > { %1838 = vrot.lane.b32.xlu1 %v1837_v26, %s1858_s18 }
 0x1eb   : > { %1628 = vperm.xlu0 %1801, %v1625_v27  }
 0x1ed   : > { %1450 = vrot.lane.b32.xlu2 %v1856_v11, %s1858_s18 }
 0x21f   : > { %v1804_v28 = vpop.permute.xlu2 %1803 }
 0x220   : > { %v1806_v29 = vunpack.i.h.bf16 %v1804_v28  ;;  %v1805_v30 = vunpack.i.l.bf16 %v1804_v28 }
 0x222   : > { %v1000_v32 = vsel %vm322_vm7, %v1805_v30, %v1806_v29 }
 0x223   : > { %1023 = vmatpush.msra.mxu2 %v1000_v32 }
 0x224   : > { %1750 = vmatmul.msk.f32.vlgmr.msra.gmra.mxu2 %vm1004_vm10, %v1749_v31 }
 0x227   : > { %v1128_v33 = vpop.permute.xlu2 %1127 }
 0x22f   : > { %v1391_v34 = vpop.permute.xlu2 %1390 }
 0x235   : > { %v999_v35 = vpop.permute.xlu0 %998 }
 0x236   : > { %v1001_v36 = vsel %vm322_vm7, %v1806_v29, %v999_v35 }
 0x237   : > { %1043 = vmatpush.msra.mxu3 %v1001_v36  ;;  %v1819_v37 = vpop.permute.xlu2 %1818 }
 0x238   : > { %1751 = vmatmul.msk.f32.vlgmr.msra.gmra.mxu3 %vm1004_vm10, %v1749_v31  ;;  %v1821_v44 = vunpack.i.h.bf16 %v1819_v37  ;;  %v1820_v45 = vunpack.i.l.bf16 %v1819_v37 }
 0x239   : > { %v1809_v11 = vpop.permute.xlu1 %1808 }
 0x23a   : > { %v1811_v38 = vunpack.i.h.bf16 %v1809_v11  ;;  %v1810_v39 = vunpack.i.l.bf16 %v1809_v11  ;;  %v1200_v53 = vsel %vm548_vm4, %v1820_v45, %v1821_v44 }
 0x23c   : > { %v1129_v41 = vsel %vm469_vm5, %v1810_v39, %v1811_v38  ;;  %v1130_v42 = vsel %vm469_vm5, %v1811_v38, %v1128_v33 }
 0x23d   : > { %v1814_v43 = vpop.permute.xlu0 %1813  ;;  %1151 = vmatpush.msrb.mxu2 %v1129_v41  ;;  %1171 = vmatpush.msrb.mxu3 %v1130_v42 }
 0x23e   : > { %v1816_v46 = vunpack.i.h.bf16 %v1814_v43  ;;  %v1815_v47 = vunpack.i.l.bf16 %v1814_v43  ;;  %1755 = vmatmul.msk.f32.vlgmr.msrb.gmra.mxu2 %vm1004_vm10, %v1754_v40 }
 0x23f   : > { %1289 = vmatpush.msra.mxu3 %v2078_v50  ;;  %1269 = vmatpush.msra.mxu2 %v2076_v49  ;;  %v1760_v50 = vld [vmem:[%s2202_s3 + $0x20] sm:$0xff]  ;;  %v1834_v57 = vpop.permute.xlu2 %1833 }
 0x240   : > { %1756 = vmatmul.msk.f32.vlgmr.msrb.gmra.mxu3 %vm1004_vm10, %v1754_v40  ;;  %v1057_v51 = vsel %vm387_vm6, %v1815_v47, %v1816_v46  ;;  %v1836_v59 = vunpack.i.h.bf16 %v1834_v57  ;;  %v1835_v60 = vunpack.i.l.bf16 %v1834_v57 }
 0x241   : > { %1079 = vmatpush.msrb.mxu0 %v1057_v51  ;;  %v1056_v52 = vpop.permute.xlu1 %1055 }
 0x242   : > { %1752 = vmatmul.msk.f32.vlgmr.msrb.gmra.mxu0 %vm1004_vm10, %v988_v48  ;;  %v1058_v54 = vsel %vm387_vm6, %v1816_v46, %v1056_v52  ;;  %v1523_v5 = vsel %vm299_vm1, %v1835_v60, %v1836_v59 }
 0x243   : > { %1222 = vmatpush.msra.mxu0 %v1200_v53  ;;  %1099 = vmatpush.msrb.mxu1 %v1058_v54 }
 0x244   : > { %1753 = vmatmul.msk.f32.vlgmr.msrb.gmra.mxu1 %vm1004_vm10, %v988_v48 }
 0x245   : > { %v1199_v49 = vpop.permute.xlu0 %1198 }
 0x246   : > { %v1201_v55 = vsel %vm548_vm4, %v1821_v44, %v1199_v49  ;;  %1761 = vmatmul.msk.f32.vlgmr.msra.gmra.mxu2 %vm1004_vm10, %v1760_v50 }
 0x247   : > { %1242 = vmatpush.msra.mxu1 %v1201_v55  ;;  %v1451_v16 = vpop.permute.xlu2 %1450 }
 0x248   : > { %1762 = vmatmul.msk.f32.vlgmr.msra.gmra.mxu3 %vm1004_vm10, %v1760_v50 }
 0x249   : > { %v1824_v58 = vpop.permute.xlu1 %1823 }
 0x24a   : > { %1758 = vmatmul.msk.f32.vlgmr.msra.gmra.mxu0 %vm1004_vm10, %v1757_v56  ;;  %v1826_v61 = vunpack.i.h.bf16 %v1824_v58  ;;  %v1825_v62 = vunpack.i.l.bf16 %v1824_v58 }
 0x24c   : > { %1759 = vmatmul.msk.f32.vlgmr.msra.gmra.mxu1 %vm1004_vm10, %v1757_v56  ;;  %v1392_v0 = vsel %vm447_vm2, %v1825_v62, %v1826_v61  ;;  %v1393_v1 = vsel %vm447_vm2, %v1826_v61, %v1391_v34 }
 0x24d   : > { %v1829_v2 = vpop.permute.xlu0 %1828  ;;  %1414 = vmatpush.msrb.mxu2 %v1392_v0  ;;  %1434 = vmatpush.msrb.mxu3 %v1393_v1 }
 0x24e   : > { %v1831_v3 = vunpack.i.h.bf16 %v1829_v2  ;;  %v1830_v4 = vunpack.i.l.bf16 %v1829_v2  ;;  %1767 = vmatmul.msk.f32.vlgmr.msrb.gmra.mxu2 %vm1004_vm10, %v1766_v63 }
 0x24f   : > { %1545 = vmatpush.msra.mxu2 %v1523_v5 }
 0x250   : > { %1768 = vmatmul.msk.f32.vlgmr.msrb.gmra.mxu3 %vm1004_vm10, %v1766_v63  ;;  %v1321_v7 = vsel %vm526_vm3, %v1830_v4, %v1831_v3 }
 0x251   : > { %1343 = vmatpush.msrb.mxu0 %v1321_v7  ;;  %v1320_v8 = vpop.permute.xlu1 %1319 }
 0x252   : > { %1764 = vmatmul.msk.f32.vlgmr.msrb.gmra.mxu0 %vm1004_vm10, %v1763_v6  ;;  %v1322_v9 = vsel %vm526_vm3, %v1831_v3, %v1320_v8 }
 0x253   : > { %1363 = vmatpush.msrb.mxu1 %v1322_v9 }
 0x254   : > { %1765 = vmatmul.msk.f32.vlgmr.msrb.gmra.mxu1 %vm1004_vm10, %v1763_v6 }
 0x255   : > { %v1522_v13 = vpop.permute.xlu0 %1521 }
 0x256   : > { %v1524_v14 = vsel %vm299_vm1, %v1836_v59, %v1522_v13  ;;  %1773 = vmatmul.msk.f32.vlgmr.msra.gmra.mxu2 %vm1004_vm10, %v1772_v12 }
 0x257   : > { %1565 = vmatpush.msra.mxu3 %v1524_v14 }
 0x258   : > { %1774 = vmatmul.msk.f32.vlgmr.msra.gmra.mxu3 %vm1004_vm10, %v1772_v12 }
 0x259   : > { %v1839_v15 = vpop.permute.xlu1 %1838 }
 0x25a   : > { %v1841_v17 = vunpack.i.h.bf16 %v1839_v15  ;;  %v1840_v18 = vunpack.i.l.bf16 %v1839_v15 }
 0x25c   : > { %v1453_v10 = vsel %vm828_vm9, %v1841_v17, %v1451_v16  ;;  %v1452_v20 = vsel %vm828_vm9, %v1840_v18, %v1841_v17 }
 0x25d   : > { %1474 = vmatpush.msra.mxu0 %v1452_v20  ;;  %1494 = vmatpush.msra.mxu1 %v1453_v10  ;;  %v1629_v57 = vpop.permute.xlu0 %1628 }
 0x25e   : > { %1770 = vmatmul.msk.f32.vlgmr.msra.gmra.mxu0 %vm1004_vm10, %v1769_v19  ;;  %1771 = vmatmul.msk.f32.vlgmr.msra.gmra.mxu1 %vm1004_vm10, %v1769_v19 }
 0x25f   : > { %1775 = vmatpush.msk.msrb.mxu0 %vm294_vm0, %v1576_v21  ;;  %1777 = vmatpush.msk.msrb.mxu1 %vm294_vm0, %v1577_v22 }
 0x266   : > { %1776 = vmatmul.msk.f32.vlgmr.msrb.gmra.mxu0 %vm325_vm8, %v1573_v23  ;;  %1778 = vmatmul.msk.f32.vlgmr.msrb.gmra.mxu1 %vm325_vm8, %v1573_v23 }
 0x2a7   : > { %v1025_v24 = vpop.f32.mrf.mxu2 }
 0x2bb   : > { %v1045_v25 = vpop.f32.mrf.mxu3 }
 0x2bf   : > { %v1081_v26 = vpop.f32.mrf.mxu0 }
 0x2c0   : > { %v1082_v33 = vadd.f32 %v1081_v26, %v1025_v24 }
 0x2c1   : > { %v1101_v27 = vpop.f32.mrf.mxu1  ;;  %v1153_v28 = vpop.f32.mrf.mxu2 }
 0x2c2   : > { %v1102_v34 = vadd.f32 %v1101_v27, %v1045_v25  ;;  %v1176_v36 = vadd.f32 %v1153_v28, %v1082_v33 }
 0x2c3   : > { %v1173_v29 = vpop.f32.mrf.mxu3 }
 0x2c4   : > { %v1177_v11 = vadd.f32 %v1173_v29, %v1102_v34 }
 0x2c7   : > { %v1224_v30 = vpop.f32.mrf.mxu0 }
 0x2c8   : > { %v1247_v37 = vadd.f32 %v1224_v30, %v1176_v36 }
 0x2c9   : > { %v1244_v31 = vpop.f32.mrf.mxu1  ;;  %v1271_v32 = vpop.f32.mrf.mxu2 }
 0x2ca   : > { %v1248_v38 = vadd.f32 %v1244_v31, %v1177_v11  ;;  %v1294_v43 = vadd.f32 %v1271_v32, %v1247_v37 }
 0x2cb   : > { %v1291_v35 = vpop.f32.mrf.mxu3 }
 0x2cc   : > { %v1295_v44 = vadd.f32 %v1291_v35, %v1248_v38 }
 0x2cf   : > { %v1345_v41 = vpop.f32.mrf.mxu0 }
 0x2d0   : > { %v1368_v45 = vadd.f32 %v1345_v41, %v1294_v43 }
 0x2d1   : > { %v1416_v39 = vpop.f32.mrf.mxu2  ;;  %v1365_v42 = vpop.f32.mrf.mxu1 }
 0x2d2   : > { %v1369_v46 = vadd.f32 %v1365_v42, %v1295_v44  ;;  %v1439_v47 = vadd.f32 %v1416_v39, %v1368_v45 }
 0x2d3   : > { %v1436_v40 = vpop.f32.mrf.mxu3 }
 0x2d4   : > { %v1440_v48 = vadd.f32 %v1436_v40, %v1369_v46 }
 0x2d9   : > { %v1547_v51 = vpop.f32.mrf.mxu2 }
 0x2db   : > { %v1567_v52 = vpop.f32.mrf.mxu3  ;;  %v1476_v53 = vpop.f32.mrf.mxu0 }
 0x2dc   : > { %v1496_v54 = vpop.f32.mrf.mxu1  ;;  %v1499_v50 = vadd.f32 %v1476_v53, %v1439_v47 }
 0x2dd   : > { %v1500_v49 = vadd.f32 %v1496_v54, %v1440_v48 }
 0x2de   : > { %v1570_v55 = vadd.f32 %v1547_v51, %v1499_v50 }
 0x2df   : > { %v1571_v56 = vadd.f32 %v1567_v52, %v1500_v49 }
 0x2e0   : > { %v1631_v58 = vadd.f32 %v1629_v57, %v1570_v55 }
 0x2e1   : > { %v1632_v59 = vadd.f32 %v1629_v57, %v1571_v56 }
 0x2e3   : > { %v1602_v60 = vpop.f32.mrf.mxu0 }
 0x2e4   : > { %v1622_v61 = vpop.f32.mrf.mxu1  ;;  %v1633_v62 = vadd.f32 %v1631_v58, %v1602_v60 }
 0x2e5   : > { %v1634_v63 = vadd.f32 %v1632_v59, %v1622_v61 }
 0x2e6   : > { %v1635_v0 = vmax.f32 %v1633_v62, 0.0 }
 0x2e7   : > { %v1636_v1 = vmax.f32 %v1634_v63, 0.0 }
 0x2e8   : > { %1637 = vst [vmem:[%s278_s30] sm:$0xff] %v1635_v0 }
 0x2e9   : > { %1638 = vst [vmem:[%s278_s30 + $0x8] sm:$0xff] %v1636_v1 }
 0x2ea PF: > { %s17_s24 = sadd.s32 1, %s1848_s24  }
 0x2eb   : > { %p14_p4 = scmp.ge.s32.totalorder %s17_s24, 4  }
 0x2ed   :  { %16 = sbr.rel (!%p14_p4) target bundleno = 1 (0x1), region = 103 }

</bundles_post_ra>
